<compile_context>
chip_gen: v6e
topology: v6e:2x2x1
jax: 0.10.0
libtpu: 0.0.40
codegen_flags: <defaults>
</compile_context>

<pallas_src>
import functools

import jax
import jax.numpy as jnp
from jax.experimental import pallas as pl
from jax.experimental.pallas import tpu as pltpu


def _se_gate_kernel(x_ref, w1_ref, b1_ref, w2_ref, b2_ref, g_ref, o_ref,
                    acc_ref, *, inv_hw):
    k = pl.program_id(0)

    @pl.when(k == 0)
    def _init():
        acc_ref[...] = jnp.zeros_like(acc_ref)

    # ---- hot loop: pure VPU lane-block adds, fully hidden under the DMA ----
    # x block is (B, C, thw) with thw a multiple of 128; fold each 128-lane
    # chunk into the (B, C, 128) f32 accumulator.  No XLU reduce, no relayout.
    thw = x_ref.shape[-1]
    for j in range(thw // 128):
        acc_ref[...] += x_ref[:, :, j * 128:(j + 1) * 128].astype(jnp.float32)

    # ---- epilogue: runs once on the last grid step ----
    @pl.when(k == pl.num_programs(0) - 1)
    def _epilogue():
        # single cross-lane reduce + scale (padded zeros don't affect the sum)
        pooled = jnp.sum(acc_ref[...], axis=-1) * inv_hw                # (B, C)

        # fc1 + ReLU : (B, C) @ (C, C//r) + (1, C//r)
        h = jnp.dot(pooled, w1_ref[...],
                    preferred_element_type=jnp.float32) + b1_ref[...]
        h = jnp.maximum(h, 0.0)

        # fc2 : (B, C//r) @ (C//r, 2) + (1, 2)
        logits = jnp.dot(h, w2_ref[...],
                         preferred_element_type=jnp.float32) + b2_ref[...]

        # gumbel_softmax(tau=1, hard=True): the forward VALUE is exactly the
        # one-hot of argmax(logits + gumbel_noise); the soft softmax only
        # affects the straight-through gradient, not the forward pass.
        y = logits + g_ref[...]                                         # tau=1
        ymax = jnp.max(y, axis=-1, keepdims=True)
        col = jax.lax.broadcasted_iota(jnp.int32, y.shape, 1)
        big = jnp.int32(2 ** 30)
        # first-occurrence argmax (torch.max tie-break); exact ties are
        # measure-zero with continuous Gumbel noise.
        idx = jnp.min(jnp.where(y >= ymax, col, big), axis=-1, keepdims=True)
        o_ref[...] = (col == idx).astype(o_ref.dtype)


def _choose_spatial_tile(B, C, hw_pad, itemsize, budget_bytes=24 << 20):
    """Pick the spatial tile (a multiple of 128 dividing hw_pad).

    * If the whole padded x double-buffers within `budget_bytes`, use a single
      full block (grid=(1,)) — per-step overhead (~0.35 us) would exceed the
      tiny overlap win for small x.
    * Otherwise use the largest divisor tile whose double buffer fits the
      budget (=> >=2 grid steps, so the DMA pipelines with the VPU adds).
    The budget is conservative for v7x's 64 MiB VMEM and is made explicit via
    vmem_limit_bytes so it also holds on v5e's 16 MiB scoped default.
    """
    row_bytes = B * C * itemsize
    if 2 * hw_pad * row_bytes <= budget_bytes:
        return hw_pad
    cand = [t for t in range(128, hw_pad, 128)
            if hw_pad % t == 0 and 2 * t * row_bytes <= budget_bytes]
    # Fallback 128 only triggers for pathologically large B*C (tile C too).
    return max(cand) if cand else 128


def attention_se_block(x_nchw, w1, b1, w2, b2, gumbel_noise):
    """x_nchw: (B, C, H, W).  w1: (C//r, C), b1: (C//r,), w2: (2, C//r), b2: (2,)."""
    B, C, H, W = x_nchw.shape
    hw = H * W
    hid = w1.shape[0]

    # Metadata-only reshape; pad H*W to a multiple of 128 so every block is
    # lane-dense (zeros don't change the pooling sum; inv_hw uses true hw).
    # TODO(synk): in-kernel tail masking (cdiv grid + iota mask) would avoid
    # this extra HBM copy for unaligned H*W on very large feature maps.
    hw_pad = ((hw + 127) // 128) * 128
    x3 = x_nchw.reshape(B, C, hw)
    if hw_pad != hw:
        x3 = jnp.pad(x3, ((0, 0), (0, 0), (0, hw_pad - hw)))

    w1_t = w1.T.astype(jnp.float32)               # (C, hid)
    b1_2 = b1.reshape(1, hid).astype(jnp.float32)
    w2_t = w2.T.astype(jnp.float32)               # (hid, 2)
    b2_2 = b2.reshape(1, 2).astype(jnp.float32)
    g2 = gumbel_noise.reshape(B, 2).astype(jnp.float32)

    thw = _choose_spatial_tile(B, C, hw_pad, x3.dtype.itemsize)
    grid = (hw_pad // thw,)

    kernel = functools.partial(_se_gate_kernel, inv_hw=1.0 / float(hw))

    # VMEM accounting: double-buffered x block + resident small operands
    # + (B, C, 128) f32 accumulator + output; explicit limit keeps v5e's
    # 16 MiB scoped default from binding and stays within v7x's 64 MiB.
    x_block_bytes = B * C * thw * x3.dtype.itemsize
    small_bytes = (w1_t.size + b1_2.size + w2_t.size + b2_2.size + g2.size) * 4
    acc_bytes = B * C * 128 * 4
    vmem_need = 2 * x_block_bytes + 2 * small_bytes + acc_bytes + 2 * B * 2 * 4
    vmem_limit = int(max(vmem_need + (2 << 20), 32 << 20))

    flops = B * C * hw_pad + 2 * B * C * hid + 2 * B * hid * 2
    bytes_accessed = (
        x3.size * x3.dtype.itemsize
        + (w1_t.size + b1_2.size + w2_t.size + b2_2.size + g2.size) * 4
        + B * 2 * 4
    )

    grid_spec = pltpu.PrefetchScalarGridSpec(
        num_scalar_prefetch=0,
        grid=grid,
        in_specs=[
            pl.BlockSpec((B, C, thw), lambda k: (0, 0, k)),   # streamed x tiles
            pl.BlockSpec((C, hid), lambda k: (0, 0)),          # resident weights
            pl.BlockSpec((1, hid), lambda k: (0, 0)),
            pl.BlockSpec((hid, 2), lambda k: (0, 0)),
            pl.BlockSpec((1, 2), lambda k: (0, 0)),
            pl.BlockSpec((B, 2), lambda k: (0, 0)),            # gumbel noise
        ],
        out_specs=pl.BlockSpec((B, 2), lambda k: (0, 0)),
        # (B, C, 128) f32 lane-block accumulator: keeps the XLU reduce out of
        # the hot loop (only ~B*C*512 bytes).
        scratch_shapes=[pltpu.VMEM((B, C, 128), jnp.float32)],
    )

    return pl.pallas_call(
        kernel,
        out_shape=jax.ShapeDtypeStruct((B, 2), jnp.float32),
        grid_spec=grid_spec,
        compiler_params=pltpu.CompilerParams(
            dimension_semantics=("arbitrary",),  # grid axis carries the reduction
            vmem_limit_bytes=vmem_limit,
        ),
        cost_estimate=pl.CostEstimate(
            flops=flops, transcendentals=0, bytes_accessed=bytes_accessed),
    )(x3, w1_t, b1_2, w2_t, b2_2, g2)


if __name__ == "__main__":
    # Module hyper-params (synthetic, deterministic init — no checkpoint).
    channels = 128
    reduction = 4
    hidden = channels // reduction
    temperature = 1  # stored by the module but unused in forward()

    def run_case(B, H, W):
        key = jax.random.PRNGKey(0)
        kx, kw1, kb1, kw2, kg = jax.random.split(key, 5)

        x = jax.random.normal(kx, (B, channels, H, W), dtype=jnp.float32)

        # nn.Linear-style init (deterministic via PRNGKey(0) splits).
        lim1 = 1.0 / jnp.sqrt(channels)
        w1 = jax.random.uniform(kw1, (hidden, channels), minval=-lim1, maxval=lim1)
        b1 = jax.random.uniform(kb1, (hidden,), minval=-lim1, maxval=lim1)
        lim2 = 1.0 / jnp.sqrt(hidden)
        w2 = jax.random.uniform(kw2, (2, hidden), minval=-lim2, maxval=lim2)
        b2 = jnp.array([0.1, 2.0], dtype=jnp.float32)  # fc2.bias.data[0]=0.1, [1]=2

        # Standard-Gumbel noise (== -log(Exp(1)) used by F.gumbel_softmax).
        gumbel_noise = jax.random.gumbel(kg, (B, 2), dtype=jnp.float32)

        out = attention_se_block(x, w1, b1, w2, b2, gumbel_noise)
        out = jax.block_until_ready(out)

        assert out.shape == (B, 2)
        # each row must be a one-hot vector
        assert bool(jnp.all(jnp.sum(out, axis=-1) == 1.0))
        assert bool(jnp.all((out == 0.0) | (out == 1.0)))

        # cross-check against a pure-JAX reference of the same forward
        pooled_ref = jnp.mean(x.reshape(B, channels, H * W), axis=-1)
        h_ref = jnp.maximum(pooled_ref @ w1.T + b1, 0.0)
        logits_ref = h_ref @ w2.T + b2
        onehot_ref = jax.nn.one_hot(jnp.argmax(logits_ref + gumbel_noise, axis=-1), 2)
        assert bool(jnp.all(out == onehot_ref))

    run_case(2, 32, 32)   # H*W = 1024: lane-aligned, single-block fast path
    run_case(2, 14, 14)   # H*W = 196: unaligned -> zero-padded to 256

    print("KERNEL_OK")
</pallas_src>

<mosaic_0001>
module attributes {stable_mosaic.version = 11 : i64} {
  func.func @_se_gate_kernel(%arg0: i32, %arg1: memref<2x128x1024xf32, #tpu.memory_space<vmem>>, %arg2: memref<128x32xf32, #tpu.memory_space<vmem>>, %arg3: memref<1x32xf32, #tpu.memory_space<vmem>>, %arg4: memref<32x2xf32, #tpu.memory_space<vmem>>, %arg5: memref<1x2xf32, #tpu.memory_space<vmem>>, %arg6: memref<2x2xf32, #tpu.memory_space<vmem>>, %arg7: memref<2x2xf32, #tpu.memory_space<vmem>>, %arg8: memref<2x128x128xf32, #tpu.memory_space<vmem>>) attributes {dimension_semantics = [#tpu.dimension_semantics<arbitrary>], iteration_bounds = array<i64: 1>, scalar_prefetch = 0 : i64, scratch_operands = 1 : i64, tpu.core_type = #tpu.core_type<tc>, window_params = [{transform_indices = @transform_0, window_bounds = array<i64: 2, 128, 1024>}, {pipeline_mode = #tpu.pipeline_mode<synchronous>, transform_indices = @transform_1, window_bounds = array<i64: 128, 32>}, {pipeline_mode = #tpu.pipeline_mode<synchronous>, transform_indices = @transform_2, window_bounds = array<i64: 1, 32>}, {pipeline_mode = #tpu.pipeline_mode<synchronous>, transform_indices = @transform_3, window_bounds = array<i64: 32, 2>}, {pipeline_mode = #tpu.pipeline_mode<synchronous>, transform_indices = @transform_4, window_bounds = array<i64: 1, 2>}, {pipeline_mode = #tpu.pipeline_mode<synchronous>, transform_indices = @transform_5, window_bounds = array<i64: 2, 2>}, {pipeline_mode = #tpu.pipeline_mode<synchronous>, transform_indices = @transform_6, window_bounds = array<i64: 2, 2>}]} {
    %c0_i32 = arith.constant 0 : i32
    %0 = arith.cmpi eq, %arg0, %c0_i32 : i32
    %1 = arith.extui %0 : i1 to i32
    %c0_i32_0 = arith.constant 0 : i32
    %2 = arith.cmpi ne, %1, %c0_i32_0 : i32
    scf.if %2 {
      %cst = arith.constant 0.000000e+00 : f32
      %38 = vector.broadcast %cst : f32 to vector<2x128x128xf32>
      %c0_67 = arith.constant 0 : index
      %c0_68 = arith.constant 0 : index
      %c0_69 = arith.constant 0 : index
      %39 = vector.load %arg8[%c0_67, %c0_68, %c0_69] : memref<2x128x128xf32, #tpu.memory_space<vmem>>, vector<2x128x128xf32>
      tpu.vector_store %arg8[%c0_67, %c0_68, %c0_69], %38 {strides = array<i32>} : memref<2x128x128xf32, #tpu.memory_space<vmem>>, vector<2x128x128xf32>,
    } else {
    }
    %c0 = arith.constant 0 : index
    %c0_1 = arith.constant 0 : index
    %c0_2 = arith.constant 0 : index
    %3 = vector.load %arg8[%c0, %c0_1, %c0_2] : memref<2x128x128xf32, #tpu.memory_space<vmem>>, vector<2x128x128xf32>
    %c0_3 = arith.constant 0 : index
    %c0_4 = arith.constant 0 : index
    %c0_5 = arith.constant 0 : index
    %4 = vector.load %arg1[%c0_3, %c0_4, %c0_5] : memref<2x128x1024xf32, #tpu.memory_space<vmem>>, vector<2x128x128xf32>
    %5 = arith.addf %3, %4 : vector<2x128x128xf32>
    %c0_6 = arith.constant 0 : index
    %c0_7 = arith.constant 0 : index
    %c0_8 = arith.constant 0 : index
    %6 = vector.load %arg8[%c0_6, %c0_7, %c0_8] : memref<2x128x128xf32, #tpu.memory_space<vmem>>, vector<2x128x128xf32>
    tpu.vector_store %arg8[%c0_6, %c0_7, %c0_8], %5 {strides = array<i32>} : memref<2x128x128xf32, #tpu.memory_space<vmem>>, vector<2x128x128xf32>,
    %c0_9 = arith.constant 0 : index
    %c0_10 = arith.constant 0 : index
    %c0_11 = arith.constant 0 : index
    %7 = vector.load %arg8[%c0_9, %c0_10, %c0_11] : memref<2x128x128xf32, #tpu.memory_space<vmem>>, vector<2x128x128xf32>
    %c0_12 = arith.constant 0 : index
    %c0_13 = arith.constant 0 : index
    %c128 = arith.constant 128 : index
    %8 = vector.load %arg1[%c0_12, %c0_13, %c128] : memref<2x128x1024xf32, #tpu.memory_space<vmem>>, vector<2x128x128xf32>
    %9 = arith.addf %7, %8 : vector<2x128x128xf32>
    %c0_14 = arith.constant 0 : index
    %c0_15 = arith.constant 0 : index
    %c0_16 = arith.constant 0 : index
    %10 = vector.load %arg8[%c0_14, %c0_15, %c0_16] : memref<2x128x128xf32, #tpu.memory_space<vmem>>, vector<2x128x128xf32>
    tpu.vector_store %arg8[%c0_14, %c0_15, %c0_16], %9 {strides = array<i32>} : memref<2x128x128xf32, #tpu.memory_space<vmem>>, vector<2x128x128xf32>,
    %c0_17 = arith.constant 0 : index
    %c0_18 = arith.constant 0 : index
    %c0_19 = arith.constant 0 : index
    %11 = vector.load %arg8[%c0_17, %c0_18, %c0_19] : memref<2x128x128xf32, #tpu.memory_space<vmem>>, vector<2x128x128xf32>
    %c0_20 = arith.constant 0 : index
    %c0_21 = arith.constant 0 : index
    %c256 = arith.constant 256 : index
    %12 = vector.load %arg1[%c0_20, %c0_21, %c256] : memref<2x128x1024xf32, #tpu.memory_space<vmem>>, vector<2x128x128xf32>
    %13 = arith.addf %11, %12 : vector<2x128x128xf32>
    %c0_22 = arith.constant 0 : index
    %c0_23 = arith.constant 0 : index
    %c0_24 = arith.constant 0 : index
    %14 = vector.load %arg8[%c0_22, %c0_23, %c0_24] : memref<2x128x128xf32, #tpu.memory_space<vmem>>, vector<2x128x128xf32>
    tpu.vector_store %arg8[%c0_22, %c0_23, %c0_24], %13 {strides = array<i32>} : memref<2x128x128xf32, #tpu.memory_space<vmem>>, vector<2x128x128xf32>,
    %c0_25 = arith.constant 0 : index
    %c0_26 = arith.constant 0 : index
    %c0_27 = arith.constant 0 : index
    %15 = vector.load %arg8[%c0_25, %c0_26, %c0_27] : memref<2x128x128xf32, #tpu.memory_space<vmem>>, vector<2x128x128xf32>
    %c0_28 = arith.constant 0 : index
    %c0_29 = arith.constant 0 : index
    %c384 = arith.constant 384 : index
    %16 = vector.load %arg1[%c0_28, %c0_29, %c384] : memref<2x128x1024xf32, #tpu.memory_space<vmem>>, vector<2x128x128xf32>
    %17 = arith.addf %15, %16 : vector<2x128x128xf32>
    %c0_30 = arith.constant 0 : index
    %c0_31 = arith.constant 0 : index
    %c0_32 = arith.constant 0 : index
    %18 = vector.load %arg8[%c0_30, %c0_31, %c0_32] : memref<2x128x128xf32, #tpu.memory_space<vmem>>, vector<2x128x128xf32>
    tpu.vector_store %arg8[%c0_30, %c0_31, %c0_32], %17 {strides = array<i32>} : memref<2x128x128xf32, #tpu.memory_space<vmem>>, vector<2x128x128xf32>,
    %c0_33 = arith.constant 0 : index
    %c0_34 = arith.constant 0 : index
    %c0_35 = arith.constant 0 : index
    %19 = vector.load %arg8[%c0_33, %c0_34, %c0_35] : memref<2x128x128xf32, #tpu.memory_space<vmem>>, vector<2x128x128xf32>
    %c0_36 = arith.constant 0 : index
    %c0_37 = arith.constant 0 : index
    %c512 = arith.constant 512 : index
    %20 = vector.load %arg1[%c0_36, %c0_37, %c512] : memref<2x128x1024xf32, #tpu.memory_space<vmem>>, vector<2x128x128xf32>
    %21 = arith.addf %19, %20 : vector<2x128x128xf32>
    %c0_38 = arith.constant 0 : index
    %c0_39 = arith.constant 0 : index
    %c0_40 = arith.constant 0 : index
    %22 = vector.load %arg8[%c0_38, %c0_39, %c0_40] : memref<2x128x128xf32, #tpu.memory_space<vmem>>, vector<2x128x128xf32>
    tpu.vector_store %arg8[%c0_38, %c0_39, %c0_40], %21 {strides = array<i32>} : memref<2x128x128xf32, #tpu.memory_space<vmem>>, vector<2x128x128xf32>,
    %c0_41 = arith.constant 0 : index
    %c0_42 = arith.constant 0 : index
    %c0_43 = arith.constant 0 : index
    %23 = vector.load %arg8[%c0_41, %c0_42, %c0_43] : memref<2x128x128xf32, #tpu.memory_space<vmem>>, vector<2x128x128xf32>
    %c0_44 = arith.constant 0 : index
    %c0_45 = arith.constant 0 : index
    %c640 = arith.constant 640 : index
    %24 = vector.load %arg1[%c0_44, %c0_45, %c640] : memref<2x128x1024xf32, #tpu.memory_space<vmem>>, vector<2x128x128xf32>
    %25 = arith.addf %23, %24 : vector<2x128x128xf32>
    %c0_46 = arith.constant 0 : index
    %c0_47 = arith.constant 0 : index
    %c0_48 = arith.constant 0 : index
    %26 = vector.load %arg8[%c0_46, %c0_47, %c0_48] : memref<2x128x128xf32, #tpu.memory_space<vmem>>, vector<2x128x128xf32>
    tpu.vector_store %arg8[%c0_46, %c0_47, %c0_48], %25 {strides = array<i32>} : memref<2x128x128xf32, #tpu.memory_space<vmem>>, vector<2x128x128xf32>,
    %c0_49 = arith.constant 0 : index
    %c0_50 = arith.constant 0 : index
    %c0_51 = arith.constant 0 : index
    %27 = vector.load %arg8[%c0_49, %c0_50, %c0_51] : memref<2x128x128xf32, #tpu.memory_space<vmem>>, vector<2x128x128xf32>
    %c0_52 = arith.constant 0 : index
    %c0_53 = arith.constant 0 : index
    %c768 = arith.constant 768 : index
    %28 = vector.load %arg1[%c0_52, %c0_53, %c768] : memref<2x128x1024xf32, #tpu.memory_space<vmem>>, vector<2x128x128xf32>
    %29 = arith.addf %27, %28 : vector<2x128x128xf32>
    %c0_54 = arith.constant 0 : index
    %c0_55 = arith.constant 0 : index
    %c0_56 = arith.constant 0 : index
    %30 = vector.load %arg8[%c0_54, %c0_55, %c0_56] : memref<2x128x128xf32, #tpu.memory_space<vmem>>, vector<2x128x128xf32>
    tpu.vector_store %arg8[%c0_54, %c0_55, %c0_56], %29 {strides = array<i32>} : memref<2x128x128xf32, #tpu.memory_space<vmem>>, vector<2x128x128xf32>,
    %c0_57 = arith.constant 0 : index
    %c0_58 = arith.constant 0 : index
    %c0_59 = arith.constant 0 : index
    %31 = vector.load %arg8[%c0_57, %c0_58, %c0_59] : memref<2x128x128xf32, #tpu.memory_space<vmem>>, vector<2x128x128xf32>
    %c0_60 = arith.constant 0 : index
    %c0_61 = arith.constant 0 : index
    %c896 = arith.constant 896 : index
    %32 = vector.load %arg1[%c0_60, %c0_61, %c896] : memref<2x128x1024xf32, #tpu.memory_space<vmem>>, vector<2x128x128xf32>
    %33 = arith.addf %31, %32 : vector<2x128x128xf32>
    %c0_62 = arith.constant 0 : index
    %c0_63 = arith.constant 0 : index
    %c0_64 = arith.constant 0 : index
    %34 = vector.load %arg8[%c0_62, %c0_63, %c0_64] : memref<2x128x128xf32, #tpu.memory_space<vmem>>, vector<2x128x128xf32>
    tpu.vector_store %arg8[%c0_62, %c0_63, %c0_64], %33 {strides = array<i32>} : memref<2x128x128xf32, #tpu.memory_space<vmem>>, vector<2x128x128xf32>,
    %c0_i32_65 = arith.constant 0 : i32
    %35 = arith.cmpi eq, %arg0, %c0_i32_65 : i32
    %36 = arith.extui %35 : i1 to i32
    %c0_i32_66 = arith.constant 0 : i32
    %37 = arith.cmpi ne, %36, %c0_i32_66 : i32
    scf.if %37 {
      %c0_67 = arith.constant 0 : index
      %c0_68 = arith.constant 0 : index
      %c0_69 = arith.constant 0 : index
      %38 = vector.load %arg8[%c0_67, %c0_68, %c0_69] : memref<2x128x128xf32, #tpu.memory_space<vmem>>, vector<2x128x128xf32>
      %cst = arith.constant dense<0.000000e+00> : vector<2x128xf32>
      %39 = vector.multi_reduction <add>, %38, %cst [2] : vector<2x128x128xf32> to vector<2x128xf32>
      %cst_70 = arith.constant 9.765625E-4 : f32
      %40 = vector.broadcast %cst_70 : f32 to vector<2x128xf32>
      %41 = arith.mulf %39, %40 : vector<2x128xf32>
      %c0_71 = arith.constant 0 : index
      %c0_72 = arith.constant 0 : index
      %42 = vector.load %arg2[%c0_71, %c0_72] : memref<128x32xf32, #tpu.memory_space<vmem>>, vector<128x32xf32>
      %cst_73 = arith.constant dense<0.000000e+00> : vector<2x32xf32>
      %43 = tpu.matmul %41, %42, %cst_73 {dimension_numbers = #tpu.dot_dimension_numbers<[1], [0], [0], [1], [0, 0, 1, 1], [], []>} : vector<2x128xf32>, vector<128x32xf32>, vector<2x32xf32> -> vector<2x32xf32>
      %c0_74 = arith.constant 0 : index
      %c0_75 = arith.constant 0 : index
      %44 = vector.load %arg3[%c0_74, %c0_75] : memref<1x32xf32, #tpu.memory_space<vmem>>, vector<1x32xf32>
      %45 = vector.broadcast %44 : vector<1x32xf32> to vector<2x32xf32>
      %46 = arith.addf %43, %45 : vector<2x32xf32>
      %cst_76 = arith.constant 0.000000e+00 : f32
      %47 = vector.broadcast %cst_76 : f32 to vector<2x32xf32>
      %48 = arith.maximumf %46, %47 : vector<2x32xf32>
      %c0_77 = arith.constant 0 : index
      %c0_78 = arith.constant 0 : index
      %49 = vector.load %arg4[%c0_77, %c0_78] : memref<32x2xf32, #tpu.memory_space<vmem>>, vector<32x2xf32>
      %cst_79 = arith.constant dense<0.000000e+00> : vector<2x2xf32>
      %50 = tpu.matmul %48, %49, %cst_79 {dimension_numbers = #tpu.dot_dimension_numbers<[1], [0], [0], [1], [0, 0, 1, 1], [], []>} : vector<2x32xf32>, vector<32x2xf32>, vector<2x2xf32> -> vector<2x2xf32>
      %c0_80 = arith.constant 0 : index
      %c0_81 = arith.constant 0 : index
      %51 = vector.load %arg5[%c0_80, %c0_81] : memref<1x2xf32, #tpu.memory_space<vmem>>, vector<1x2xf32>
      %52 = vector.broadcast %51 : vector<1x2xf32> to vector<2x2xf32>
      %53 = arith.addf %50, %52 : vector<2x2xf32>
      %c0_82 = arith.constant 0 : index
      %c0_83 = arith.constant 0 : index
      %54 = vector.load %arg6[%c0_82, %c0_83] : memref<2x2xf32, #tpu.memory_space<vmem>>, vector<2x2xf32>
      %55 = arith.addf %53, %54 : vector<2x2xf32>
      %cst_84 = arith.constant dense<0xFF800000> : vector<2xf32>
      %56 = vector.multi_reduction <maximumf>, %55, %cst_84 [1] : vector<2x2xf32> to vector<2xf32>
      %57 = vector.shape_cast %56 : vector<2xf32> to vector<2x1xf32>
      %58 = tpu.iota {dimensions = array<i32: 1>} : vector<2x2xi32>
      %59 = vector.broadcast %57 : vector<2x1xf32> to vector<2x2xf32>
      %60 = arith.cmpf oge, %55, %59 : vector<2x2xf32>
      %c1073741824_i32 = arith.constant 1073741824 : i32
      %61 = vector.broadcast %c1073741824_i32 : i32 to vector<2x2xi32>
      %62 = arith.select %60, %58, %61 : vector<2x2xi1>, vector<2x2xi32>
      %cst_85 = arith.constant dense<2147483647> : vector<2xi32>
      %63 = vector.multi_reduction <minsi>, %62, %cst_85 [1] : vector<2x2xi32> to vector<2xi32>
      %64 = vector.shape_cast %63 : vector<2xi32> to vector<2x1xi32>
      %65 = vector.broadcast %64 : vector<2x1xi32> to vector<2x2xi32>
      %66 = arith.cmpi eq, %58, %65 : vector<2x2xi32>
      %67 = arith.extui %66 : vector<2x2xi1> to vector<2x2xi32>
      %68 = arith.sitofp %67 : vector<2x2xi32> to vector<2x2xf32>
      %c0_86 = arith.constant 0 : index
      %c0_87 = arith.constant 0 : index
      %69 = vector.load %arg7[%c0_86, %c0_87] : memref<2x2xf32, #tpu.memory_space<vmem>>, vector<2x2xf32>
      tpu.vector_store %arg7[%c0_86, %c0_87], %68 {strides = array<i32>} : memref<2x2xf32, #tpu.memory_space<vmem>>, vector<2x2xf32>,
    } else {
    }
    return
  }
  func.func @transform_0(%arg0: i32) -> (i32, i32, i32) {
    %c0_i32 = arith.constant 0 : i32
    %c0_i32_0 = arith.constant 0 : i32
    %c0_i32_1 = arith.constant 0 : i32
    return %c0_i32, %c0_i32_0, %arg0 : i32, i32, i32
  }
  func.func @transform_1(%arg0: i32) -> (i32, i32) {
    %c0_i32 = arith.constant 0 : i32
    %c0_i32_0 = arith.constant 0 : i32
    %c0_i32_1 = arith.constant 0 : i32
    return %c0_i32, %c0_i32_0 : i32, i32
  }
  func.func @transform_2(%arg0: i32) -> (i32, i32) {
    %c0_i32 = arith.constant 0 : i32
    %c0_i32_0 = arith.constant 0 : i32
    %c0_i32_1 = arith.constant 0 : i32
    return %c0_i32, %c0_i32_0 : i32, i32
  }
  func.func @transform_3(%arg0: i32) -> (i32, i32) {
    %c0_i32 = arith.constant 0 : i32
    %c0_i32_0 = arith.constant 0 : i32
    %c0_i32_1 = arith.constant 0 : i32
    return %c0_i32, %c0_i32_0 : i32, i32
  }
  func.func @transform_4(%arg0: i32) -> (i32, i32) {
    %c0_i32 = arith.constant 0 : i32
    %c0_i32_0 = arith.constant 0 : i32
    %c0_i32_1 = arith.constant 0 : i32
    return %c0_i32, %c0_i32_0 : i32, i32
  }
  func.func @transform_5(%arg0: i32) -> (i32, i32) {
    %c0_i32 = arith.constant 0 : i32
    %c0_i32_0 = arith.constant 0 : i32
    %c0_i32_1 = arith.constant 0 : i32
    return %c0_i32, %c0_i32_0 : i32, i32
  }
  func.func @transform_6(%arg0: i32) -> (i32, i32) {
    %c0_i32 = arith.constant 0 : i32
    %c0_i32_0 = arith.constant 0 : i32
    %c0_i32_1 = arith.constant 0 : i32
    return %c0_i32, %c0_i32_0 : i32, i32
  }
}

</mosaic_0001>

<bundles_post_ra>
// kernel: tpu_custom_call.1
= control target key start
LH: loop header
LB: loop body
LE: loop exit
PB: predicated region body
PF: predicated region fallthrough
CT: control target
= control target key end

     0   :  { %11 = vsyncpa [#allocation4], 0  ;;  %s2108_s0 = inlined_call_operand.hbm [shape: f32[2,128,1024], index: 0, kind: input, shape index: {}]   ;;  %s2109_s1 = inlined_call_operand.vmem [shape: f32[128,32], index: 1, kind: input, shape index: {}]   ;;  %s2110_s2 = inlined_call_operand.vmem [shape: f32[1,32], index: 2, kind: input, shape index: {}]   ;;  %s2111_s3 = inlined_call_operand.vmem [shape: f32[32,2], index: 3, kind: input, shape index: {}]   ;;  %s2112_s4 = inlined_call_operand.vmem [shape: f32[1,2], index: 4, kind: input, shape index: {}]   ;;  %s2113_s5 = inlined_call_operand.vmem [shape: f32[2,2], index: 5, kind: input, shape index: {}]   ;;  %s2114_s6 = inlined_call_operand.hbm [shape: f32[2,2], index: 6, kind: output, shape index: {}]  }
   0x1   :  { %12 = vsyncpa [#allocation5], 0  ;;  %s1797_s21 = smov [#allocation3]  }
   0x2   :  { %s18_s22 = sshll.u32 %s1797_s21, 4  ;;  %s19_s22 = int_to_ptr.vmem [resolvable:$true] %s18_s22 }
   0x3   :  { %s1761_s23 = scalar_lea.vmem %s19_s22, 32768  ;;  %p1766_p1 = scmp.lt.s32.totalorder %s19_s22, %s19_s22 }
   0x4   :  { %p1762_p0 = scmp.ne.s32.totalorder %s19_s22, %s1761_s23  ;;  %p1767_p2 = scmp.lt.s32.totalorder %s1761_s23, %s1761_s23 }
   0x6   :  { %p1768_p3 = por %p1767_p2, %p1766_p1 }
   0x8   :  { %p1769_p4 = pnand %p1768_p3, %p1762_p0 }
   0xa   :  { %1772 = shalt.err (!%p1769_p4)
}
   0xb   :  { %s1798_s24 = smov 1024   ;;  %s1799_s25 = smov 64  }
   0xc   :  { %24 = dma.hbm_to_vmem [thread:$0]  %s2108_s0, 32768, %s19_s22, [#allocation4], %s1798_s24, %s1798_s24, %s1799_s25  }
   0xd   :  { %1793 = dma.done.wait [#allocation4], 32768  }
   0xe   :  { %1794 = vsyncadd [#allocation4], 4294934528  ;;  %v122_v0 = vld [vmem:[#allocation3 + $0x400] sm:$0xff]  ;;  %v250_v1 = vld [vmem:[#allocation3 + $0x408] sm:$0xff]  ;;  %vm1801_vm0 = vmmov 0   ;;  %vm1295_vm1 = vcmask 130112  }
   0xf   :  { %v378_v2 = vld [vmem:[#allocation3 + $0x410] sm:$0xff]  ;;  %v282_v3 = vadd.f32 %v250_v1, %v122_v0  ;;  %v506_v4 = vld [vmem:[#allocation3 + $0x418] sm:$0xff]  ;;  %v106_v5 = vld [vmem:[#allocation3] sm:$0xff]  ;;  %vm1302_vm2 = vcmask 195712   ;;  %vm1309_vm3 = vcmask 261312   ;;  %vm1316_vm4 = vcmask 326912  }
  0x10   :  { %v234_v7 = vld [vmem:[#allocation3 + $0x8] sm:$0xff]  ;;  %v362_v8 = vld [vmem:[#allocation3 + $0x10] sm:$0xff]  ;;  %v634_v9 = vld [vmem:[#allocation3 + $0x420] sm:$0xff]  ;;  %vm1323_vm5 = vcmask 392512   ;;  %vm1330_vm6 = vcmask 458112   ;;  %vm1337_vm7 = vcmask 523712  }
  0x11   :  { %v410_v6 = vadd.f32 %v378_v2, %v282_v3  ;;  %v266_v10 = vadd.f32 %v234_v7, %v106_v5  ;;  %v490_v12 = vld [vmem:[#allocation3 + $0x18] sm:$0xff]  ;;  %v123_v13 = vld [vmem:[#allocation3 + $0x440] sm:$0xff]  ;;  %v251_v14 = vld [vmem:[#allocation3 + $0x448] sm:$0xff]  ;;  %vm1344_vm8 = vcmask 589312   ;;  %vm1351_vm9 = vcmask 654912  }
  0x12   :  { %v762_v15 = vld [vmem:[#allocation3 + $0x428] sm:$0xff]  ;;  %v283_v17 = vadd.f32 %v251_v14, %v123_v13  ;;  %v379_v18 = vld [vmem:[#allocation3 + $0x450] sm:$0xff]  ;;  %v618_v21 = vld [vmem:[#allocation3 + $0x20] sm:$0xff]  ;;  %vm1358_vm10 = vcmask 720512   ;;  %vm1365_vm11 = vcmask 786112   ;;  %vm1372_vm12 = vcmask 851712  }
  0x13   :  { %v538_v11 = vadd.f32 %v506_v4, %v410_v6  ;;  %v394_v16 = vadd.f32 %v362_v8, %v266_v10  ;;  %v890_v20 = vld [vmem:[#allocation3 + $0x430] sm:$0xff]  ;;  %v507_v22 = vld [vmem:[#allocation3 + $0x458] sm:$0xff]  ;;  %v107_v25 = vld [vmem:[#allocation3 + $0x40] sm:$0xff]  ;;  %vm1379_vm13 = vcmask 917312   ;;  %vm1386_vm14 = vcmask 982912  }
  0x14   :  { %v411_v24 = vadd.f32 %v379_v18, %v283_v17  ;;  %v235_v26 = vld [vmem:[#allocation3 + $0x48] sm:$0xff]  ;;  %v363_v27 = vld [vmem:[#allocation3 + $0x50] sm:$0xff]  ;;  %v1018_v29 = vld [vmem:[#allocation3 + $0x438] sm:$0xff]  ;;  %vm1393_vm15 = vcmask 1048512  }
  0x15   :  { %v666_v19 = vadd.f32 %v634_v9, %v538_v11  ;;  %v522_v23 = vadd.f32 %v490_v12, %v394_v16  ;;  %v746_v30 = vld [vmem:[#allocation3 + $0x28] sm:$0xff]  ;;  %v635_v31 = vld [vmem:[#allocation3 + $0x460] sm:$0xff]  ;;  %v267_v32 = vadd.f32 %v235_v26, %v107_v25  ;;  %v874_v34 = vld [vmem:[#allocation3 + $0x30] sm:$0xff] }
  0x16   :  { %v539_v35 = vadd.f32 %v507_v22, %v411_v24  ;;  %v491_v36 = vld [vmem:[#allocation3 + $0x58] sm:$0xff]  ;;  %v124_v37 = vld [vmem:[#allocation3 + $0x480] sm:$0xff]  ;;  %v763_v39 = vld [vmem:[#allocation3 + $0x468] sm:$0xff] }
  0x17   :  { %v794_v28 = vadd.f32 %v762_v15, %v666_v19  ;;  %v650_v33 = vadd.f32 %v618_v21, %v522_v23  ;;  %v395_v40 = vadd.f32 %v363_v27, %v267_v32  ;;  %v252_v41 = vld [vmem:[#allocation3 + $0x488] sm:$0xff]  ;;  %v380_v42 = vld [vmem:[#allocation3 + $0x490] sm:$0xff]  ;;  %v1002_v44 = vld [vmem:[#allocation3 + $0x38] sm:$0xff] }
  0x18   :  { %v667_v45 = vadd.f32 %v635_v31, %v539_v35  ;;  %v891_v46 = vld [vmem:[#allocation3 + $0x470] sm:$0xff]  ;;  %v619_v47 = vld [vmem:[#allocation3 + $0x60] sm:$0xff]  ;;  %v284_v48 = vadd.f32 %v252_v41, %v124_v37  ;;  %v508_v51 = vld [vmem:[#allocation3 + $0x498] sm:$0xff] }
  0x19   :  { %v922_v38 = vadd.f32 %v890_v20, %v794_v28  ;;  %v778_v43 = vadd.f32 %v746_v30, %v650_v33  ;;  %v523_v50 = vadd.f32 %v491_v36, %v395_v40  ;;  %v108_v52 = vld [vmem:[#allocation3 + $0x80] sm:$0xff]  ;;  %v236_v53 = vld [vmem:[#allocation3 + $0x88] sm:$0xff]  ;;  %v1019_v56 = vld [vmem:[#allocation3 + $0x478] sm:$0xff] }
  0x1a   :  { %v795_v55 = vadd.f32 %v763_v39, %v667_v45  ;;  %v747_v57 = vld [vmem:[#allocation3 + $0x68] sm:$0xff]  ;;  %v412_v58 = vadd.f32 %v380_v42, %v284_v48  ;;  %v268_v59 = vadd.f32 %v236_v53, %v108_v52  ;;  %v364_v60 = vld [vmem:[#allocation3 + $0x90] sm:$0xff]  ;;  %v636_v63 = vld [vmem:[#allocation3 + $0x4a0] sm:$0xff] }
  0x1b   :  { %v1050_v49 = vadd.f32 %v1018_v29, %v922_v38  ;;  %v906_v54 = vadd.f32 %v874_v34, %v778_v43  ;;  %v651_v61 = vadd.f32 %v619_v47, %v523_v50  ;;  %v875_v62 = vld [vmem:[#allocation3 + $0x70] sm:$0xff]  ;;  %v492_v0 = vld [vmem:[#allocation3 + $0x98] sm:$0xff]  ;;  %v125_v5 = vld [vmem:[#allocation3 + $0x4c0] sm:$0xff] }
  0x1c   :  { %v923_v2 = vadd.f32 %v891_v46, %v795_v55  ;;  %v540_v3 = vadd.f32 %v508_v51, %v412_v58  ;;  %v396_v4 = vadd.f32 %v364_v60, %v268_v59  ;;  %v253_v6 = vld [vmem:[#allocation3 + $0x4c8] sm:$0xff]  ;;  %v381_v7 = vld [vmem:[#allocation3 + $0x4d0] sm:$0xff]  ;;  %v1003_v9 = vld [vmem:[#allocation3 + $0x78] sm:$0xff] }
  0x1d   :  { %1165 = vadd.xlane.f32.xlu1 %v1050_v49  ;;  %v1034_v1 = vadd.f32 %v1002_v44, %v906_v54  ;;  %v779_v8 = vadd.f32 %v747_v57, %v651_v61  ;;  %v764_v10 = vld [vmem:[#allocation3 + $0x4a8] sm:$0xff]  ;;  %v620_v11 = vld [vmem:[#allocation3 + $0xa0] sm:$0xff]  ;;  %v285_v12 = vadd.f32 %v253_v6, %v125_v5  ;;  %v892_v15 = vld [vmem:[#allocation3 + $0x4b0] sm:$0xff] }
  0x1e   :  { %v1051_v13 = vadd.f32 %v1019_v56, %v923_v2  ;;  %v668_v14 = vadd.f32 %v636_v63, %v540_v3  ;;  %v524_v16 = vadd.f32 %v492_v0, %v396_v4  ;;  %v509_v17 = vld [vmem:[#allocation3 + $0x4d8] sm:$0xff]  ;;  %v109_v18 = vld [vmem:[#allocation3 + $0xc0] sm:$0xff]  ;;  %v748_v20 = vld [vmem:[#allocation3 + $0xa8] sm:$0xff] }
  0x1f   :  { %1133 = vadd.xlane.f32.xlu0 %v1034_v1  ;;  %v907_v19 = vadd.f32 %v875_v62, %v779_v8  ;;  %v413_v21 = vadd.f32 %v381_v7, %v285_v12  ;;  %v237_v22 = vld [vmem:[#allocation3 + $0xc8] sm:$0xff]  ;;  %v365_v23 = vld [vmem:[#allocation3 + $0xd0] sm:$0xff]  ;;  %v1020_v25 = vld [vmem:[#allocation3 + $0x4b8] sm:$0xff] }
  0x20   :  { %v796_v24 = vadd.f32 %v764_v10, %v668_v14  ;;  %v652_v26 = vadd.f32 %v620_v11, %v524_v16  ;;  %v876_v27 = vld [vmem:[#allocation3 + $0xb0] sm:$0xff]  ;;  %v637_v28 = vld [vmem:[#allocation3 + $0x4e0] sm:$0xff]  ;;  %v269_v29 = vadd.f32 %v237_v22, %v109_v18  ;;  %v493_v32 = vld [vmem:[#allocation3 + $0xd8] sm:$0xff] }
  0x21   :  { %1167 = vadd.xlane.f32.xlu1 %v1051_v13  ;;  %v1035_v30 = vadd.f32 %v1003_v9, %v907_v19  ;;  %v541_v31 = vadd.f32 %v509_v17, %v413_v21  ;;  %v126_v33 = vld [vmem:[#allocation3 + $0x500] sm:$0xff]  ;;  %v254_v34 = vld [vmem:[#allocation3 + $0x508] sm:$0xff]  ;;  %v1004_v37 = vld [vmem:[#allocation3 + $0xb8] sm:$0xff] }
  0x22   :  { %v924_v35 = vadd.f32 %v892_v15, %v796_v24  ;;  %v780_v36 = vadd.f32 %v748_v20, %v652_v26  ;;  %v765_v38 = vld [vmem:[#allocation3 + $0x4e8] sm:$0xff]  ;;  %v397_v39 = vadd.f32 %v365_v23, %v269_v29  ;;  %v286_v40 = vadd.f32 %v254_v34, %v126_v33  ;;  %v382_v41 = vld [vmem:[#allocation3 + $0x510] sm:$0xff]  ;;  %v621_v44 = vld [vmem:[#allocation3 + $0xe0] sm:$0xff] }
  0x23   :  { %1135 = vadd.xlane.f32.xlu0 %v1035_v30  ;;  %v669_v42 = vadd.f32 %v637_v28, %v541_v31  ;;  %v893_v43 = vld [vmem:[#allocation3 + $0x4f0] sm:$0xff]  ;;  %v510_v45 = vld [vmem:[#allocation3 + $0x518] sm:$0xff]  ;;  %v110_v50 = vld [vmem:[#allocation3 + $0x100] sm:$0xff] }
  0x24   :  { %v1052_v46 = vadd.f32 %v1020_v25, %v924_v35  ;;  %v908_v47 = vadd.f32 %v876_v27, %v780_v36  ;;  %v525_v48 = vadd.f32 %v493_v32, %v397_v39  ;;  %v414_v49 = vadd.f32 %v382_v41, %v286_v40  ;;  %v238_v51 = vld [vmem:[#allocation3 + $0x108] sm:$0xff]  ;;  %v366_v52 = vld [vmem:[#allocation3 + $0x110] sm:$0xff]  ;;  %v1021_v54 = vld [vmem:[#allocation3 + $0x4f8] sm:$0xff] }
  0x25   :  { %v797_v53 = vadd.f32 %v765_v38, %v669_v42  ;;  %v749_v55 = vld [vmem:[#allocation3 + $0xe8] sm:$0xff]  ;;  %v638_v56 = vld [vmem:[#allocation3 + $0x520] sm:$0xff]  ;;  %v270_v57 = vadd.f32 %v238_v51, %v110_v50  ;;  %v877_v60 = vld [vmem:[#allocation3 + $0xf0] sm:$0xff] }
  0x26   :  { %1169 = vadd.xlane.f32.xlu1 %v1052_v46  ;;  %v1036_v58 = vadd.f32 %v1004_v37, %v908_v47  ;;  %v653_v59 = vadd.f32 %v621_v44, %v525_v48  ;;  %v542_v61 = vadd.f32 %v510_v45, %v414_v49  ;;  %v494_v62 = vld [vmem:[#allocation3 + $0x118] sm:$0xff]  ;;  %v127_v63 = vld [vmem:[#allocation3 + $0x540] sm:$0xff]  ;;  %v766_v1 = vld [vmem:[#allocation3 + $0x528] sm:$0xff] }
  0x27   :  { %v925_v0 = vadd.f32 %v893_v43, %v797_v53  ;;  %v398_v2 = vadd.f32 %v366_v52, %v270_v57  ;;  %v255_v3 = vld [vmem:[#allocation3 + $0x548] sm:$0xff]  ;;  %v383_v4 = vld [vmem:[#allocation3 + $0x550] sm:$0xff]  ;;  %v1005_v6 = vld [vmem:[#allocation3 + $0xf8] sm:$0xff] }
  0x28   :  { %1137 = vadd.xlane.f32.xlu0 %v1036_v58  ;;  %v781_v5 = vadd.f32 %v749_v55, %v653_v59  ;;  %v670_v7 = vadd.f32 %v638_v56, %v542_v61  ;;  %v894_v8 = vld [vmem:[#allocation3 + $0x530] sm:$0xff]  ;;  %v622_v9 = vld [vmem:[#allocation3 + $0x120] sm:$0xff]  ;;  %v287_v10 = vadd.f32 %v255_v3, %v127_v63  ;;  %v511_v13 = vld [vmem:[#allocation3 + $0x558] sm:$0xff] }
  0x29   :  { %v1053_v11 = vadd.f32 %v1021_v54, %v925_v0  ;;  %v526_v12 = vadd.f32 %v494_v62, %v398_v2  ;;  %v111_v14 = vld [vmem:[#allocation3 + $0x140] sm:$0xff]  ;;  %v239_v15 = vld [vmem:[#allocation3 + $0x148] sm:$0xff]  ;;  %v1022_v18 = vld [vmem:[#allocation3 + $0x538] sm:$0xff] }
  0x2a   :  { %v909_v16 = vadd.f32 %v877_v60, %v781_v5  ;;  %v798_v17 = vadd.f32 %v766_v1, %v670_v7  ;;  %v750_v19 = vld [vmem:[#allocation3 + $0x128] sm:$0xff]  ;;  %v415_v20 = vadd.f32 %v383_v4, %v287_v10  ;;  %v271_v21 = vadd.f32 %v239_v15, %v111_v14  ;;  %v367_v22 = vld [vmem:[#allocation3 + $0x150] sm:$0xff]  ;;  %v639_v25 = vld [vmem:[#allocation3 + $0x560] sm:$0xff] }
  0x2b   :  { %1171 = vadd.xlane.f32.xlu1 %v1053_v11  ;;  %v654_v23 = vadd.f32 %v622_v9, %v526_v12  ;;  %v878_v24 = vld [vmem:[#allocation3 + $0x130] sm:$0xff]  ;;  %v495_v26 = vld [vmem:[#allocation3 + $0x158] sm:$0xff]  ;;  %v128_v31 = vld [vmem:[#allocation3 + $0x580] sm:$0xff] }
  0x2c   :  { %v1037_v27 = vadd.f32 %v1005_v6, %v909_v16  ;;  %v926_v28 = vadd.f32 %v894_v8, %v798_v17  ;;  %v543_v29 = vadd.f32 %v511_v13, %v415_v20  ;;  %v399_v30 = vadd.f32 %v367_v22, %v271_v21  ;;  %v256_v32 = vld [vmem:[#allocation3 + $0x588] sm:$0xff]  ;;  %v384_v33 = vld [vmem:[#allocation3 + $0x590] sm:$0xff]  ;;  %v1006_v35 = vld [vmem:[#allocation3 + $0x138] sm:$0xff] }
  0x2d   :  { %v782_v34 = vadd.f32 %v750_v19, %v654_v23  ;;  %v767_v36 = vld [vmem:[#allocation3 + $0x568] sm:$0xff]  ;;  %v623_v37 = vld [vmem:[#allocation3 + $0x160] sm:$0xff]  ;;  %v288_v38 = vadd.f32 %v256_v32, %v128_v31  ;;  %v895_v41 = vld [vmem:[#allocation3 + $0x570] sm:$0xff] }
  0x2e   :  { %1139 = vadd.xlane.f32.xlu0 %v1037_v27  ;;  %v1054_v39 = vadd.f32 %v1022_v18, %v926_v28  ;;  %v671_v40 = vadd.f32 %v639_v25, %v543_v29  ;;  %v527_v42 = vadd.f32 %v495_v26, %v399_v30  ;;  %v512_v43 = vld [vmem:[#allocation3 + $0x598] sm:$0xff]  ;;  %v112_v44 = vld [vmem:[#allocation3 + $0x180] sm:$0xff]  ;;  %v751_v46 = vld [vmem:[#allocation3 + $0x168] sm:$0xff] }
  0x2f   :  { %v910_v45 = vadd.f32 %v878_v24, %v782_v34  ;;  %v416_v47 = vadd.f32 %v384_v33, %v288_v38  ;;  %v240_v48 = vld [vmem:[#allocation3 + $0x188] sm:$0xff]  ;;  %v368_v49 = vld [vmem:[#allocation3 + $0x190] sm:$0xff]  ;;  %v1023_v51 = vld [vmem:[#allocation3 + $0x578] sm:$0xff] }
  0x30   :  { %1173 = vadd.xlane.f32.xlu1 %v1054_v39  ;;  %v799_v50 = vadd.f32 %v767_v36, %v671_v40  ;;  %v655_v52 = vadd.f32 %v623_v37, %v527_v42  ;;  %v879_v53 = vld [vmem:[#allocation3 + $0x170] sm:$0xff]  ;;  %v640_v54 = vld [vmem:[#allocation3 + $0x5a0] sm:$0xff]  ;;  %v272_v55 = vadd.f32 %v240_v48, %v112_v44  ;;  %v496_v58 = vld [vmem:[#allocation3 + $0x198] sm:$0xff] }
  0x31   :  { %v1038_v56 = vadd.f32 %v1006_v35, %v910_v45  ;;  %v544_v57 = vadd.f32 %v512_v43, %v416_v47  ;;  %v129_v59 = vld [vmem:[#allocation3 + $0x5c0] sm:$0xff]  ;;  %v257_v60 = vld [vmem:[#allocation3 + $0x5c8] sm:$0xff]  ;;  %v1007_v63 = vld [vmem:[#allocation3 + $0x178] sm:$0xff] }
  0x32   :  { %v927_v61 = vadd.f32 %v895_v41, %v799_v50  ;;  %v783_v62 = vadd.f32 %v751_v46, %v655_v52  ;;  %v768_v0 = vld [vmem:[#allocation3 + $0x5a8] sm:$0xff]  ;;  %v400_v1 = vadd.f32 %v368_v49, %v272_v55  ;;  %v289_v2 = vadd.f32 %v257_v60, %v129_v59  ;;  %v385_v3 = vld [vmem:[#allocation3 + $0x5d0] sm:$0xff]  ;;  %v624_v6 = vld [vmem:[#allocation3 + $0x1a0] sm:$0xff] }
  0x33   :  { %1141 = vadd.xlane.f32.xlu0 %v1038_v56  ;;  %v672_v4 = vadd.f32 %v640_v54, %v544_v57  ;;  %v896_v5 = vld [vmem:[#allocation3 + $0x5b0] sm:$0xff]  ;;  %v513_v7 = vld [vmem:[#allocation3 + $0x5d8] sm:$0xff]  ;;  %v113_v12 = vld [vmem:[#allocation3 + $0x1c0] sm:$0xff] }
  0x34   :  { %v1055_v8 = vadd.f32 %v1023_v51, %v927_v61  ;;  %v911_v9 = vadd.f32 %v879_v53, %v783_v62  ;;  %v528_v10 = vadd.f32 %v496_v58, %v400_v1  ;;  %v417_v11 = vadd.f32 %v385_v3, %v289_v2  ;;  %v241_v13 = vld [vmem:[#allocation3 + $0x1c8] sm:$0xff]  ;;  %v369_v14 = vld [vmem:[#allocation3 + $0x1d0] sm:$0xff]  ;;  %v1024_v16 = vld [vmem:[#allocation3 + $0x5b8] sm:$0xff] }
  0x35   :  { %v800_v15 = vadd.f32 %v768_v0, %v672_v4  ;;  %v752_v17 = vld [vmem:[#allocation3 + $0x1a8] sm:$0xff]  ;;  %v641_v18 = vld [vmem:[#allocation3 + $0x5e0] sm:$0xff]  ;;  %v273_v19 = vadd.f32 %v241_v13, %v113_v12  ;;  %v880_v22 = vld [vmem:[#allocation3 + $0x1b0] sm:$0xff] }
  0x36   :  { %1175 = vadd.xlane.f32.xlu1 %v1055_v8  ;;  %v1039_v20 = vadd.f32 %v1007_v63, %v911_v9  ;;  %v656_v21 = vadd.f32 %v624_v6, %v528_v10  ;;  %v545_v23 = vadd.f32 %v513_v7, %v417_v11  ;;  %v497_v24 = vld [vmem:[#allocation3 + $0x1d8] sm:$0xff]  ;;  %v130_v25 = vld [vmem:[#allocation3 + $0x600] sm:$0xff]  ;;  %v769_v27 = vld [vmem:[#allocation3 + $0x5e8] sm:$0xff] }
  0x37   :  { %v928_v26 = vadd.f32 %v896_v5, %v800_v15  ;;  %v401_v28 = vadd.f32 %v369_v14, %v273_v19  ;;  %v258_v29 = vld [vmem:[#allocation3 + $0x608] sm:$0xff]  ;;  %v386_v30 = vld [vmem:[#allocation3 + $0x610] sm:$0xff]  ;;  %v1008_v32 = vld [vmem:[#allocation3 + $0x1b8] sm:$0xff] }
  0x38   :  { %1143 = vadd.xlane.f32.xlu0 %v1039_v20  ;;  %v784_v31 = vadd.f32 %v752_v17, %v656_v21  ;;  %v673_v33 = vadd.f32 %v641_v18, %v545_v23  ;;  %v897_v34 = vld [vmem:[#allocation3 + $0x5f0] sm:$0xff]  ;;  %v625_v35 = vld [vmem:[#allocation3 + $0x1e0] sm:$0xff]  ;;  %v290_v36 = vadd.f32 %v258_v29, %v130_v25  ;;  %v514_v39 = vld [vmem:[#allocation3 + $0x618] sm:$0xff] }
  0x39   :  { %v1056_v37 = vadd.f32 %v1024_v16, %v928_v26  ;;  %v529_v38 = vadd.f32 %v497_v24, %v401_v28  ;;  %v114_v40 = vld [vmem:[#allocation3 + $0x200] sm:$0xff]  ;;  %v242_v41 = vld [vmem:[#allocation3 + $0x208] sm:$0xff]  ;;  %v1025_v44 = vld [vmem:[#allocation3 + $0x5f8] sm:$0xff] }
  0x3a   :  { %v912_v42 = vadd.f32 %v880_v22, %v784_v31  ;;  %v801_v43 = vadd.f32 %v769_v27, %v673_v33  ;;  %v753_v45 = vld [vmem:[#allocation3 + $0x1e8] sm:$0xff]  ;;  %v418_v46 = vadd.f32 %v386_v30, %v290_v36  ;;  %v274_v47 = vadd.f32 %v242_v41, %v114_v40  ;;  %v370_v48 = vld [vmem:[#allocation3 + $0x210] sm:$0xff]  ;;  %v642_v51 = vld [vmem:[#allocation3 + $0x620] sm:$0xff] }
  0x3b   :  { %1177 = vadd.xlane.f32.xlu1 %v1056_v37  ;;  %v657_v49 = vadd.f32 %v625_v35, %v529_v38  ;;  %v881_v50 = vld [vmem:[#allocation3 + $0x1f0] sm:$0xff]  ;;  %v498_v52 = vld [vmem:[#allocation3 + $0x218] sm:$0xff]  ;;  %v131_v57 = vld [vmem:[#allocation3 + $0x640] sm:$0xff] }
  0x3c   :  { %v1040_v53 = vadd.f32 %v1008_v32, %v912_v42  ;;  %v929_v54 = vadd.f32 %v897_v34, %v801_v43  ;;  %v546_v55 = vadd.f32 %v514_v39, %v418_v46  ;;  %v402_v56 = vadd.f32 %v370_v48, %v274_v47  ;;  %v259_v58 = vld [vmem:[#allocation3 + $0x648] sm:$0xff]  ;;  %v387_v59 = vld [vmem:[#allocation3 + $0x650] sm:$0xff]  ;;  %v1009_v61 = vld [vmem:[#allocation3 + $0x1f8] sm:$0xff] }
  0x3d   :  { %v785_v60 = vadd.f32 %v753_v45, %v657_v49  ;;  %v770_v62 = vld [vmem:[#allocation3 + $0x628] sm:$0xff]  ;;  %v626_v63 = vld [vmem:[#allocation3 + $0x220] sm:$0xff]  ;;  %v291_v0 = vadd.f32 %v259_v58, %v131_v57  ;;  %v898_v3 = vld [vmem:[#allocation3 + $0x630] sm:$0xff] }
  0x3e   :  { %1145 = vadd.xlane.f32.xlu0 %v1040_v53  ;;  %v1057_v1 = vadd.f32 %v1025_v44, %v929_v54  ;;  %v674_v2 = vadd.f32 %v642_v51, %v546_v55  ;;  %v530_v4 = vadd.f32 %v498_v52, %v402_v56  ;;  %v515_v5 = vld [vmem:[#allocation3 + $0x658] sm:$0xff]  ;;  %v115_v6 = vld [vmem:[#allocation3 + $0x240] sm:$0xff]  ;;  %v754_v8 = vld [vmem:[#allocation3 + $0x228] sm:$0xff] }
  0x3f   :  { %v913_v7 = vadd.f32 %v881_v50, %v785_v60  ;;  %v419_v9 = vadd.f32 %v387_v59, %v291_v0  ;;  %v243_v10 = vld [vmem:[#allocation3 + $0x248] sm:$0xff]  ;;  %v371_v11 = vld [vmem:[#allocation3 + $0x250] sm:$0xff]  ;;  %v1026_v13 = vld [vmem:[#allocation3 + $0x638] sm:$0xff] }
  0x40   :  { %1179 = vadd.xlane.f32.xlu1 %v1057_v1  ;;  %v802_v12 = vadd.f32 %v770_v62, %v674_v2  ;;  %v658_v14 = vadd.f32 %v626_v63, %v530_v4  ;;  %v882_v15 = vld [vmem:[#allocation3 + $0x230] sm:$0xff]  ;;  %v643_v16 = vld [vmem:[#allocation3 + $0x660] sm:$0xff]  ;;  %v275_v17 = vadd.f32 %v243_v10, %v115_v6  ;;  %v499_v20 = vld [vmem:[#allocation3 + $0x258] sm:$0xff] }
  0x41   :  { %v1041_v18 = vadd.f32 %v1009_v61, %v913_v7  ;;  %v547_v19 = vadd.f32 %v515_v5, %v419_v9  ;;  %v132_v21 = vld [vmem:[#allocation3 + $0x680] sm:$0xff]  ;;  %v260_v22 = vld [vmem:[#allocation3 + $0x688] sm:$0xff]  ;;  %v1010_v25 = vld [vmem:[#allocation3 + $0x238] sm:$0xff] }
  0x42   :  { %v930_v23 = vadd.f32 %v898_v3, %v802_v12  ;;  %v786_v24 = vadd.f32 %v754_v8, %v658_v14  ;;  %v771_v26 = vld [vmem:[#allocation3 + $0x668] sm:$0xff]  ;;  %v403_v27 = vadd.f32 %v371_v11, %v275_v17  ;;  %v292_v28 = vadd.f32 %v260_v22, %v132_v21  ;;  %v388_v29 = vld [vmem:[#allocation3 + $0x690] sm:$0xff]  ;;  %v627_v32 = vld [vmem:[#allocation3 + $0x260] sm:$0xff] }
  0x43   :  { %1147 = vadd.xlane.f32.xlu0 %v1041_v18  ;;  %v675_v30 = vadd.f32 %v643_v16, %v547_v19  ;;  %v899_v31 = vld [vmem:[#allocation3 + $0x670] sm:$0xff]  ;;  %v516_v33 = vld [vmem:[#allocation3 + $0x698] sm:$0xff]  ;;  %v116_v38 = vld [vmem:[#allocation3 + $0x280] sm:$0xff] }
  0x44   :  { %v1058_v34 = vadd.f32 %v1026_v13, %v930_v23  ;;  %v914_v35 = vadd.f32 %v882_v15, %v786_v24  ;;  %v531_v36 = vadd.f32 %v499_v20, %v403_v27  ;;  %v420_v37 = vadd.f32 %v388_v29, %v292_v28  ;;  %v244_v39 = vld [vmem:[#allocation3 + $0x288] sm:$0xff]  ;;  %v372_v40 = vld [vmem:[#allocation3 + $0x290] sm:$0xff]  ;;  %v1027_v42 = vld [vmem:[#allocation3 + $0x678] sm:$0xff] }
  0x45   :  { %v803_v41 = vadd.f32 %v771_v26, %v675_v30  ;;  %v755_v43 = vld [vmem:[#allocation3 + $0x268] sm:$0xff]  ;;  %v644_v44 = vld [vmem:[#allocation3 + $0x6a0] sm:$0xff]  ;;  %v276_v45 = vadd.f32 %v244_v39, %v116_v38  ;;  %v883_v48 = vld [vmem:[#allocation3 + $0x270] sm:$0xff] }
  0x46   :  { %1181 = vadd.xlane.f32.xlu1 %v1058_v34  ;;  %v1042_v46 = vadd.f32 %v1010_v25, %v914_v35  ;;  %v659_v47 = vadd.f32 %v627_v32, %v531_v36  ;;  %v548_v49 = vadd.f32 %v516_v33, %v420_v37  ;;  %v500_v50 = vld [vmem:[#allocation3 + $0x298] sm:$0xff]  ;;  %v133_v51 = vld [vmem:[#allocation3 + $0x6c0] sm:$0xff]  ;;  %v772_v53 = vld [vmem:[#allocation3 + $0x6a8] sm:$0xff] }
  0x47   :  { %v931_v52 = vadd.f32 %v899_v31, %v803_v41  ;;  %v404_v54 = vadd.f32 %v372_v40, %v276_v45  ;;  %v261_v55 = vld [vmem:[#allocation3 + $0x6c8] sm:$0xff]  ;;  %v389_v56 = vld [vmem:[#allocation3 + $0x6d0] sm:$0xff]  ;;  %v1011_v58 = vld [vmem:[#allocation3 + $0x278] sm:$0xff] }
  0x48   :  { %1149 = vadd.xlane.f32.xlu0 %v1042_v46  ;;  %v787_v57 = vadd.f32 %v755_v43, %v659_v47  ;;  %v676_v59 = vadd.f32 %v644_v44, %v548_v49  ;;  %v900_v60 = vld [vmem:[#allocation3 + $0x6b0] sm:$0xff]  ;;  %v628_v61 = vld [vmem:[#allocation3 + $0x2a0] sm:$0xff]  ;;  %v293_v62 = vadd.f32 %v261_v55, %v133_v51  ;;  %v517_v1 = vld [vmem:[#allocation3 + $0x6d8] sm:$0xff] }
  0x49   :  { %v1059_v63 = vadd.f32 %v1027_v42, %v931_v52  ;;  %v532_v0 = vadd.f32 %v500_v50, %v404_v54  ;;  %v117_v2 = vld [vmem:[#allocation3 + $0x2c0] sm:$0xff]  ;;  %v245_v3 = vld [vmem:[#allocation3 + $0x2c8] sm:$0xff]  ;;  %v1028_v6 = vld [vmem:[#allocation3 + $0x6b8] sm:$0xff] }
  0x4a   :  { %v915_v4 = vadd.f32 %v883_v48, %v787_v57  ;;  %v804_v5 = vadd.f32 %v772_v53, %v676_v59  ;;  %v756_v7 = vld [vmem:[#allocation3 + $0x2a8] sm:$0xff]  ;;  %v421_v8 = vadd.f32 %v389_v56, %v293_v62  ;;  %v277_v9 = vadd.f32 %v245_v3, %v117_v2  ;;  %v373_v10 = vld [vmem:[#allocation3 + $0x2d0] sm:$0xff]  ;;  %v645_v13 = vld [vmem:[#allocation3 + $0x6e0] sm:$0xff] }
  0x4b   :  { %1183 = vadd.xlane.f32.xlu1 %v1059_v63  ;;  %v660_v11 = vadd.f32 %v628_v61, %v532_v0  ;;  %v884_v12 = vld [vmem:[#allocation3 + $0x2b0] sm:$0xff]  ;;  %v501_v14 = vld [vmem:[#allocation3 + $0x2d8] sm:$0xff]  ;;  %v134_v19 = vld [vmem:[#allocation3 + $0x700] sm:$0xff] }
  0x4c   :  { %v1043_v15 = vadd.f32 %v1011_v58, %v915_v4  ;;  %v932_v16 = vadd.f32 %v900_v60, %v804_v5  ;;  %v549_v17 = vadd.f32 %v517_v1, %v421_v8  ;;  %v405_v18 = vadd.f32 %v373_v10, %v277_v9  ;;  %v262_v20 = vld [vmem:[#allocation3 + $0x708] sm:$0xff]  ;;  %v390_v21 = vld [vmem:[#allocation3 + $0x710] sm:$0xff]  ;;  %v1012_v23 = vld [vmem:[#allocation3 + $0x2b8] sm:$0xff] }
  0x4d   :  { %v788_v22 = vadd.f32 %v756_v7, %v660_v11  ;;  %v773_v24 = vld [vmem:[#allocation3 + $0x6e8] sm:$0xff]  ;;  %v629_v25 = vld [vmem:[#allocation3 + $0x2e0] sm:$0xff]  ;;  %v294_v26 = vadd.f32 %v262_v20, %v134_v19  ;;  %v901_v29 = vld [vmem:[#allocation3 + $0x6f0] sm:$0xff]  ;;  %v1800_v19 = vmov 0.0  }
  0x4e   :  { %1151 = vadd.xlane.f32.xlu0 %v1043_v15  ;;  %v1060_v27 = vadd.f32 %v1028_v6, %v932_v16  ;;  %v677_v28 = vadd.f32 %v645_v13, %v549_v17  ;;  %v533_v30 = vadd.f32 %v501_v14, %v405_v18  ;;  %v518_v31 = vld [vmem:[#allocation3 + $0x718] sm:$0xff]  ;;  %v118_v32 = vld [vmem:[#allocation3 + $0x300] sm:$0xff]  ;;  %v757_v34 = vld [vmem:[#allocation3 + $0x2e8] sm:$0xff]  ;;  %1701 = vmatprep.subr.mxu0 %v1800_v19 }
  0x4f   :  { %v916_v33 = vadd.f32 %v884_v12, %v788_v22  ;;  %v422_v35 = vadd.f32 %v390_v21, %v294_v26  ;;  %v246_v36 = vld [vmem:[#allocation3 + $0x308] sm:$0xff]  ;;  %v374_v37 = vld [vmem:[#allocation3 + $0x310] sm:$0xff]  ;;  %v1029_v39 = vld [vmem:[#allocation3 + $0x6f8] sm:$0xff]  ;;  %1736 = vmatprep.subr.mxu1 %v1800_v19  ;;  %1733 = vmatprep.mubr.msk.f32.mxu0 %vm1801_vm0, %v1800_v19 }
  0x50   :  { %1185 = vadd.xlane.f32.xlu1 %v1060_v27  ;;  %v805_v38 = vadd.f32 %v773_v24, %v677_v28  ;;  %v661_v40 = vadd.f32 %v629_v25, %v533_v30  ;;  %v885_v41 = vld [vmem:[#allocation3 + $0x2f0] sm:$0xff]  ;;  %v646_v42 = vld [vmem:[#allocation3 + $0x720] sm:$0xff]  ;;  %v278_v43 = vadd.f32 %v246_v36, %v118_v32  ;;  %v502_v46 = vld [vmem:[#allocation3 + $0x318] sm:$0xff]  ;;  %1744 = vmatprep.mubr.msk.f32.mxu1 %vm1801_vm0, %v1800_v19  ;;  %vm1474_vm0 = vcmask 1041409  }
  0x51   :  { %v1044_v44 = vadd.f32 %v1012_v23, %v916_v33  ;;  %v550_v45 = vadd.f32 %v518_v31, %v422_v35  ;;  %v135_v47 = vld [vmem:[#allocation3 + $0x740] sm:$0xff]  ;;  %v263_v48 = vld [vmem:[#allocation3 + $0x748] sm:$0xff]  ;;  %v1013_v51 = vld [vmem:[#allocation3 + $0x2f8] sm:$0xff] }
  0x52   :  { %v933_v49 = vadd.f32 %v901_v29, %v805_v38  ;;  %v789_v50 = vadd.f32 %v757_v34, %v661_v40  ;;  %v774_v52 = vld [vmem:[#allocation3 + $0x728] sm:$0xff]  ;;  %v406_v53 = vadd.f32 %v374_v37, %v278_v43  ;;  %v295_v54 = vadd.f32 %v263_v48, %v135_v47  ;;  %v391_v55 = vld [vmem:[#allocation3 + $0x750] sm:$0xff]  ;;  %v630_v58 = vld [vmem:[#allocation3 + $0x320] sm:$0xff] }
  0x53   :  { %1153 = vadd.xlane.f32.xlu0 %v1044_v44  ;;  %v678_v56 = vadd.f32 %v646_v42, %v550_v45  ;;  %v902_v57 = vld [vmem:[#allocation3 + $0x730] sm:$0xff]  ;;  %v519_v59 = vld [vmem:[#allocation3 + $0x758] sm:$0xff]  ;;  %v119_v0 = vld [vmem:[#allocation3 + $0x340] sm:$0xff] }
  0x54   :  { %v1061_v60 = vadd.f32 %v1029_v39, %v933_v49  ;;  %v917_v61 = vadd.f32 %v885_v41, %v789_v50  ;;  %v534_v62 = vadd.f32 %v502_v46, %v406_v53  ;;  %v423_v63 = vadd.f32 %v391_v55, %v295_v54  ;;  %v247_v1 = vld [vmem:[#allocation3 + $0x348] sm:$0xff]  ;;  %v375_v2 = vld [vmem:[#allocation3 + $0x350] sm:$0xff]  ;;  %v1030_v4 = vld [vmem:[#allocation3 + $0x738] sm:$0xff] }
  0x55   :  { %v806_v3 = vadd.f32 %v774_v52, %v678_v56  ;;  %v758_v5 = vld [vmem:[#allocation3 + $0x328] sm:$0xff]  ;;  %v647_v6 = vld [vmem:[#allocation3 + $0x760] sm:$0xff]  ;;  %v279_v7 = vadd.f32 %v247_v1, %v119_v0  ;;  %v886_v10 = vld [vmem:[#allocation3 + $0x330] sm:$0xff] }
  0x56   :  { %1187 = vadd.xlane.f32.xlu1 %v1061_v60  ;;  %v1045_v8 = vadd.f32 %v1013_v51, %v917_v61  ;;  %v662_v9 = vadd.f32 %v630_v58, %v534_v62  ;;  %v551_v11 = vadd.f32 %v519_v59, %v423_v63  ;;  %v503_v12 = vld [vmem:[#allocation3 + $0x358] sm:$0xff]  ;;  %v136_v13 = vld [vmem:[#allocation3 + $0x780] sm:$0xff]  ;;  %v775_v15 = vld [vmem:[#allocation3 + $0x768] sm:$0xff] }
  0x57   :  { %v934_v14 = vadd.f32 %v902_v57, %v806_v3  ;;  %v407_v16 = vadd.f32 %v375_v2, %v279_v7  ;;  %v264_v17 = vld [vmem:[#allocation3 + $0x788] sm:$0xff]  ;;  %v392_v18 = vld [vmem:[#allocation3 + $0x790] sm:$0xff]  ;;  %v1014_v21 = vld [vmem:[#allocation3 + $0x338] sm:$0xff] }
  0x58   :  { %1155 = vadd.xlane.f32.xlu0 %v1045_v8  ;;  %v790_v20 = vadd.f32 %v758_v5, %v662_v9  ;;  %v679_v22 = vadd.f32 %v647_v6, %v551_v11  ;;  %v903_v23 = vld [vmem:[#allocation3 + $0x770] sm:$0xff]  ;;  %v631_v24 = vld [vmem:[#allocation3 + $0x360] sm:$0xff]  ;;  %v296_v25 = vadd.f32 %v264_v17, %v136_v13  ;;  %v520_v28 = vld [vmem:[#allocation3 + $0x798] sm:$0xff] }
  0x59   :  { %v1062_v26 = vadd.f32 %v1030_v4, %v934_v14  ;;  %v535_v27 = vadd.f32 %v503_v12, %v407_v16  ;;  %v120_v29 = vld [vmem:[#allocation3 + $0x380] sm:$0xff]  ;;  %v248_v30 = vld [vmem:[#allocation3 + $0x388] sm:$0xff]  ;;  %v1031_v33 = vld [vmem:[#allocation3 + $0x778] sm:$0xff] }
  0x5a   :  { %v918_v31 = vadd.f32 %v886_v10, %v790_v20  ;;  %v807_v32 = vadd.f32 %v775_v15, %v679_v22  ;;  %v759_v34 = vld [vmem:[#allocation3 + $0x368] sm:$0xff]  ;;  %v424_v35 = vadd.f32 %v392_v18, %v296_v25  ;;  %v280_v36 = vadd.f32 %v248_v30, %v120_v29  ;;  %v376_v37 = vld [vmem:[#allocation3 + $0x390] sm:$0xff]  ;;  %v648_v40 = vld [vmem:[#allocation3 + $0x7a0] sm:$0xff] }
  0x5b   :  { %1189 = vadd.xlane.f32.xlu1 %v1062_v26  ;;  %v663_v38 = vadd.f32 %v631_v24, %v535_v27  ;;  %v887_v39 = vld [vmem:[#allocation3 + $0x370] sm:$0xff]  ;;  %v504_v41 = vld [vmem:[#allocation3 + $0x398] sm:$0xff]  ;;  %v137_v46 = vld [vmem:[#allocation3 + $0x7c0] sm:$0xff] }
  0x5c   :  { %v1046_v42 = vadd.f32 %v1014_v21, %v918_v31  ;;  %v935_v43 = vadd.f32 %v903_v23, %v807_v32  ;;  %v552_v44 = vadd.f32 %v520_v28, %v424_v35  ;;  %v408_v45 = vadd.f32 %v376_v37, %v280_v36  ;;  %v265_v47 = vld [vmem:[#allocation3 + $0x7c8] sm:$0xff]  ;;  %v393_v48 = vld [vmem:[#allocation3 + $0x7d0] sm:$0xff]  ;;  %v1015_v50 = vld [vmem:[#allocation3 + $0x378] sm:$0xff] }
  0x5d   :  { %v791_v49 = vadd.f32 %v759_v34, %v663_v38  ;;  %v776_v51 = vld [vmem:[#allocation3 + $0x7a8] sm:$0xff]  ;;  %v632_v52 = vld [vmem:[#allocation3 + $0x3a0] sm:$0xff]  ;;  %v297_v53 = vadd.f32 %v265_v47, %v137_v46  ;;  %v904_v56 = vld [vmem:[#allocation3 + $0x7b0] sm:$0xff] }
  0x5e   :  { %1157 = vadd.xlane.f32.xlu0 %v1046_v42  ;;  %v1063_v54 = vadd.f32 %v1031_v33, %v935_v43  ;;  %v680_v55 = vadd.f32 %v648_v40, %v552_v44  ;;  %v536_v57 = vadd.f32 %v504_v41, %v408_v45  ;;  %v521_v58 = vld [vmem:[#allocation3 + $0x7d8] sm:$0xff]  ;;  %v121_v59 = vld [vmem:[#allocation3 + $0x3c0] sm:$0xff]  ;;  %v760_v61 = vld [vmem:[#allocation3 + $0x3a8] sm:$0xff] }
  0x5f   :  { %v919_v60 = vadd.f32 %v887_v39, %v791_v49  ;;  %v425_v62 = vadd.f32 %v393_v48, %v297_v53  ;;  %v249_v63 = vld [vmem:[#allocation3 + $0x3c8] sm:$0xff]  ;;  %v377_v0 = vld [vmem:[#allocation3 + $0x3d0] sm:$0xff]  ;;  %v1032_v2 = vld [vmem:[#allocation3 + $0x7b8] sm:$0xff] }
  0x60   :  { %1191 = vadd.xlane.f32.xlu1 %v1063_v54  ;;  %v808_v1 = vadd.f32 %v776_v51, %v680_v55  ;;  %v664_v3 = vadd.f32 %v632_v52, %v536_v57  ;;  %v888_v4 = vld [vmem:[#allocation3 + $0x3b0] sm:$0xff]  ;;  %v649_v5 = vld [vmem:[#allocation3 + $0x7e0] sm:$0xff]  ;;  %v281_v6 = vadd.f32 %v249_v63, %v121_v59  ;;  %v505_v9 = vld [vmem:[#allocation3 + $0x3d8] sm:$0xff] }
  0x61   :  { %v1047_v7 = vadd.f32 %v1015_v50, %v919_v60  ;;  %v553_v8 = vadd.f32 %v521_v58, %v425_v62  ;;  %v1244_v10 = vld [vmem:[%s2109_s1 + $0x78] sm:$0xff]  ;;  %v1243_v11 = vld [vmem:[%s2109_s1 + $0x70] sm:$0xff]  ;;  %v777_v14 = vld [vmem:[#allocation3 + $0x7e8] sm:$0xff] }
  0x62   :  { %v936_v12 = vadd.f32 %v904_v56, %v808_v1  ;;  %v792_v13 = vadd.f32 %v760_v61, %v664_v3  ;;  %v409_v15 = vadd.f32 %v377_v0, %v281_v6  ;;  %1702 = vmatpush3.msra.mxu0 %v1244_v10  ;;  %v1016_v16 = vld [vmem:[#allocation3 + $0x3b8] sm:$0xff]  ;;  %v633_v18 = vld [vmem:[#allocation3 + $0x3e0] sm:$0xff]  ;;  %v1242_v20 = vld [vmem:[%s2109_s1 + $0x68] sm:$0xff] }
  0x63   :  { %1159 = vadd.xlane.f32.xlu0 %v1047_v7  ;;  %v681_v17 = vadd.f32 %v649_v5, %v553_v8  ;;  %1703 = vmatprep.subr.mxu0 %v1800_v19  ;;  %v905_v23 = vld [vmem:[#allocation3 + $0x7f0] sm:$0xff]  ;;  %v761_v26 = vld [vmem:[#allocation3 + $0x3e8] sm:$0xff]  ;;  %v1241_v27 = vld [vmem:[%s2109_s1 + $0x60] sm:$0xff]  ;;  %v1284_v5 = vlaneseq }
  0x64   :  { %v1064_v21 = vadd.f32 %v1032_v2, %v936_v12  ;;  %v920_v22 = vadd.f32 %v888_v4, %v792_v13  ;;  %v537_v24 = vadd.f32 %v505_v9, %v409_v15  ;;  %1704 = vmatpush3.msra.mxu0 %v1243_v11  ;;  %v1033_v29 = vld [vmem:[#allocation3 + $0x7f8] sm:$0xff]  ;;  %v889_v32 = vld [vmem:[#allocation3 + $0x3f0] sm:$0xff]  ;;  %v1238_v39 = vld [vmem:[%s2109_s1 + $0x48] sm:$0xff] }
  0x65   :  { %v809_v25 = vadd.f32 %v777_v14, %v681_v17  ;;  %1705 = vmatprep.subr.mxu0 %v1800_v19  ;;  %v1240_v33 = vld [vmem:[%s2109_s1 + $0x58] sm:$0xff]  ;;  %v1239_v37 = vld [vmem:[%s2109_s1 + $0x50] sm:$0xff]  ;;  %v1237_v41 = vld [vmem:[%s2109_s1 + $0x40] sm:$0xff]  ;;  %v1934_v8 = vand.u32 127, %v1284_v5  ;;  %v1936_v9 = vshrl.u32 %v1284_v5, 7 }
  0x66   :  { %1193 = vadd.xlane.f32.xlu1 %v1064_v21  ;;  %v1048_v28 = vadd.f32 %v1016_v16, %v920_v22  ;;  %v665_v30 = vadd.f32 %v633_v18, %v537_v24  ;;  %1706 = vmatpush3.msra.mxu0 %v1242_v20  ;;  %v1017_v36 = vld [vmem:[#allocation3 + $0x3f8] sm:$0xff]  ;;  %v1235_v43 = vld [vmem:[%s2109_s1 + $0x30] sm:$0xff]  ;;  %v1234_v44 = vld [vmem:[%s2109_s1 + $0x28] sm:$0xff] }
  0x67   :  { %v937_v31 = vadd.f32 %v905_v23, %v809_v25  ;;  %1707 = vmatprep.subr.mxu0 %v1800_v19  ;;  %v1236_v42 = vld [vmem:[%s2109_s1 + $0x38] sm:$0xff]  ;;  %v1233_v45 = vld [vmem:[%s2109_s1 + $0x20] sm:$0xff]  ;;  %v1231_v47 = vld [vmem:[%s2109_s1 + $0x10] sm:$0xff]  ;;  %v1290_v11 = vadd.s32 4294967288, %v1934_v8  ;;  %v1297_v12 = vadd.s32 4294967280, %v1934_v8  ;;  %v1304_v13 = vadd.s32 4294967272, %v1934_v8 }
  0x68   :  { %1161 = vadd.xlane.f32.xlu0 %v1048_v28  ;;  %v793_v34 = vadd.f32 %v761_v26, %v665_v30  ;;  %1708 = vmatpush3.msra.mxu0 %v1241_v27  ;;  %v1232_v46 = vld [vmem:[%s2109_s1 + $0x18] sm:$0xff]  ;;  %v1230_v48 = vld [vmem:[%s2109_s1 + $0x8] sm:$0xff]  ;;  %v1229_v49 = vld [vmem:[%s2109_s1] sm:$0xff]  ;;  %v1311_v14 = vadd.s32 4294967264, %v1934_v8  ;;  %v1318_v15 = vadd.s32 4294967256, %v1934_v8  ;;  %v1325_v16 = vadd.s32 4294967248, %v1934_v8 }
  0x69   :  { %v1065_v35 = vadd.f32 %v1033_v29, %v937_v31  ;;  %1709 = vmatprep.subr.mxu0 %v1800_v19  ;;  %v1551_v50 = vld [vmem:[%s2111_s3 + $0x18] sm:$0xff]  ;;  %v1332_v17 = vadd.s32 4294967240, %v1934_v8  ;;  %v1339_v18 = vadd.s32 4294967232, %v1934_v8  ;;  %v1346_v20 = vadd.s32 4294967224, %v1934_v8 }
  0x6a   :  { %v921_v38 = vadd.f32 %v889_v32, %v793_v34  ;;  %1710 = vmatpush3.msra.mxu0 %v1240_v33  ;;  %1737 = vmatpush3.msra.mxu1 %v1551_v50  ;;  %v1288_v22 = vsub.s32 %v1934_v8, %v1936_v9  ;;  %v1353_v23 = vadd.s32 4294967216, %v1934_v8  ;;  %v1360_v24 = vadd.s32 4294967208, %v1934_v8 }
  0x6b   :  { %1195 = vadd.xlane.f32.xlu1 %v1065_v35  ;;  %1711 = vmatprep.subr.mxu0 %v1800_v19  ;;  %v1293_v25 = vsub.s32 %v1290_v11, %v1936_v9  ;;  %v1957_v26 = vsub.s32 %v1297_v12, %v1936_v9  ;;  %v1960_v27 = vsub.s32 %v1304_v13, %v1936_v9  ;;  %v1367_v28 = vadd.s32 4294967200, %v1934_v8 }
  0x6c   :  { %v1049_v40 = vadd.f32 %v1017_v36, %v921_v38  ;;  %1712 = vmatpush3.msra.mxu0 %v1239_v37  ;;  %1738 = vmatprep.subr.mxu1 %v1800_v19  ;;  %v1964_v29 = vsub.s32 %v1311_v14, %v1936_v9  ;;  %v1967_v30 = vsub.s32 %v1318_v15, %v1936_v9  ;;  %v1374_v33 = vadd.s32 4294967192, %v1934_v8 }
  0x6d   :  { %1713 = vmatprep.subr.mxu0 %v1800_v19  ;;  %v1970_v31 = vsub.s32 %v1325_v16, %v1936_v9  ;;  %v1976_v35 = vsub.s32 %v1332_v17, %v1936_v9  ;;  %v1979_v36 = vsub.s32 %v1339_v18, %v1936_v9  ;;  %v1982_v37 = vsub.s32 %v1346_v20, %v1936_v9 }
  0x6e   :  { %1163 = vadd.xlane.f32.xlu0 %v1049_v40  ;;  %1714 = vmatpush3.msra.mxu0 %v1238_v39  ;;  %v1985_v39 = vsub.s32 %v1353_v23, %v1936_v9  ;;  %v1988_v40 = vsub.s32 %v1360_v24, %v1936_v9  ;;  %v1998_v50 = vsub.s32 %v1374_v33, %v1936_v9 }
  0x6f   :  { %1715 = vmatprep.subr.mxu0 %v1800_v19 }
  0x70   :  { %1716 = vmatpush3.msra.mxu0 %v1237_v41 }
  0x71   :  { %1717 = vmatprep.subr.mxu0 %v1800_v19 }
  0x72   :  { %1718 = vmatpush3.msra.mxu0 %v1236_v42  ;;  %v1381_v42 = vadd.s32 4294967184, %v1934_v8 }
  0x73   :  { %1719 = vmatprep.subr.mxu0 %v1800_v19 }
  0x74   :  { %1720 = vmatpush3.msra.mxu0 %v1235_v43  ;;  %v2004_v13 = vsub.s32 %v1381_v42, %v1936_v9 }
  0x75   :  { %1721 = vmatprep.subr.mxu0 %v1800_v19 }
  0x76   :  { %1722 = vmatpush3.msra.mxu0 %v1234_v44 }
  0x77   :  { %1723 = vmatprep.subr.mxu0 %v1800_v19 }
  0x78   :  { %1724 = vmatpush3.msra.mxu0 %v1233_v45 }
  0x79   :  { %1725 = vmatprep.subr.mxu0 %v1800_v19 }
  0x7a   :  { %1726 = vmatpush3.msra.mxu0 %v1232_v46  ;;  %v1994_v46 = vsub.s32 %v1367_v28, %v1936_v9 }
  0x7b   :  { %1727 = vmatprep.subr.mxu0 %v1800_v19 }
  0x7c   :  { %1728 = vmatpush3.msra.mxu0 %v1231_v47 }
  0x7d   :  { %1729 = vmatprep.subr.mxu0 %v1800_v19 }
  0x7e   :  { %1730 = vmatpush3.msra.mxu0 %v1230_v48 }
  0x7f   :  { %1731 = vmatprep.subr.mxu0 %v1800_v19 }
  0x80   :  { %1732 = vmatpush3.msra.mxu0 %v1229_v49 }
  0xa6   :  { %v1166_v51 = vpop.xlane.xlu1 %1165 }
  0xa7   :  { %v1213_v43 = vmul.f32 0.0009765625, %v1166_v51  ;;  %v1388_v51 = vadd.s32 4294967176, %v1934_v8 }
  0xa8   :  { %v1912_v52 = vpop.xlane.xlu0 %1133 }
  0xa9   :  { %v1197_v47 = vmul.f32 0.0009765625, %v1912_v52  ;;  %v1398_v52 = vrot.slane %v1213_v43, %v1288_v22  ;;  %v2016_v20 = vsub.s32 %v1388_v51, %v1936_v9 }
  0xaa   :  { %v1168_v53 = vpop.xlane.xlu1 %1167 }
  0xab   :  { %v1214_v34 = vmul.f32 0.0009765625, %v1168_v53 }
  0xac   :  { %v1136_v54 = vpop.xlane.xlu0 %1135 }
  0xad   :  { %v1198_v38 = vmul.f32 0.0009765625, %v1136_v54  ;;  %v1402_v53 = vrot.slane %v1214_v34, %v1293_v25 }
  0xaf   :  { %v1170_v55 = vpop.xlane.xlu1 %1169 }
  0xb0   :  { %v1215_v44 = vmul.f32 0.0009765625, %v1170_v55  ;;  %v1294_v55 = vrot.slane %v1198_v38, %v1293_v25 }
  0xb1   :  { %v1138_v56 = vpop.xlane.xlu0 %1137 }
  0xb2   :  { %v1199_v45 = vmul.f32 0.0009765625, %v1138_v56 }
  0xb4   :  { %v1172_v57 = vpop.xlane.xlu1 %1171 }
  0xb5   :  { %v1216_v48 = vmul.f32 0.0009765625, %v1172_v57  ;;  %v1407_v57 = vrot.slane %v1215_v44, %v1957_v26 }
  0xb7   :  { %v1140_v58 = vpop.xlane.xlu0 %1139 }
  0xb8   :  { %v1200_v49 = vmul.f32 0.0009765625, %v1140_v58  ;;  %v1301_v58 = vrot.slane %v1199_v45, %v1957_v26 }
  0xb9   :  { %v1174_v59 = vpop.xlane.xlu1 %1173 }
  0xba   :  { %v1217_v54 = vmul.f32 0.0009765625, %v1174_v59  ;;  %v1289_v59 = vrot.slane %v1197_v47, %v1288_v22  ;;  %v1308_v15 = vrot.slane %v1200_v49, %v1960_v27 }
  0xbc   :  { %v1142_v60 = vpop.xlane.xlu0 %1141  ;;  %v1417_v17 = vrot.slane %v1217_v54, %v1964_v29 }
  0xbd   :  { %v1201_v5 = vmul.f32 0.0009765625, %v1142_v60  ;;  %v1412_v60 = vrot.slane %v1216_v48, %v1960_v27 }
  0xbf   :  { %v1914_v61 = vpop.xlane.xlu1 %1175  ;;  %v1315_v18 = vrot.slane %v1201_v5, %v1964_v29 }
  0xc0   :  { %v1218_v56 = vmul.f32 0.0009765625, %v1914_v61 }
  0xc1   :  { %v1916_v62 = vpop.xlane.xlu0 %1143 }
  0xc2   :  { %v1202_v12 = vmul.f32 0.0009765625, %v1916_v62  ;;  %v1403_v62 = vsel %vm1295_vm1, %v1402_v53, %v1398_v52  ;;  %v1422_v22 = vrot.slane %v1218_v56, %v1967_v30 }
  0xc3   :  { %v1408_v25 = vsel %vm1302_vm2, %v1407_v57, %v1403_v62 }
  0xc4   :  { %v1918_v63 = vpop.xlane.xlu1 %1177  ;;  %v1322_v23 = vrot.slane %v1202_v12, %v1967_v30  ;;  %v1413_v9 = vsel %vm1309_vm3, %v1412_v60, %v1408_v25 }
  0xc5   :  { %v1219_v14 = vmul.f32 0.0009765625, %v1918_v63  ;;  %v1296_v63 = vsel %vm1295_vm1, %v1294_v55, %v1289_v59  ;;  %vm1559_vm1 = vcmask 261120  }
  0xc6   :  { %v1303_v26 = vsel %vm1302_vm2, %v1301_v58, %v1296_v63  ;;  %vm1635_vm2 = vcmask 9216  }
  0xc7   :  { %v1920_v0 = vpop.xlane.xlu0 %1145  ;;  %v1427_v27 = vrot.slane %v1219_v14, %v1970_v31  ;;  %v1310_v29 = vsel %vm1309_vm3, %v1308_v15, %v1303_v26 }
  0xc8   :  { %v1203_v61 = vmul.f32 0.0009765625, %v1920_v0  ;;  %v1317_v34 = vsel %vm1316_vm4, %v1315_v18, %v1310_v29 }
  0xc9   :  { %v1922_v1 = vpop.xlane.xlu1 %1179  ;;  %v1324_v44 = vsel %vm1323_vm5, %v1322_v23, %v1317_v34 }
  0xca   :  { %v1220_v24 = vmul.f32 0.0009765625, %v1922_v1  ;;  %v1329_v33 = vrot.slane %v1203_v61, %v1970_v31  ;;  %v1418_v1 = vsel %vm1316_vm4, %v1417_v17, %v1413_v9 }
  0xcb   :  { %v1423_v43 = vsel %vm1323_vm5, %v1422_v22, %v1418_v1 }
  0xcc   :  { %v1924_v2 = vpop.xlane.xlu0 %1147  ;;  %v1432_v45 = vrot.slane %v1220_v24, %v1976_v35 }
  0xcd   :  { %v1204_v28 = vmul.f32 0.0009765625, %v1924_v2 }
  0xcf   :  { %v1926_v3 = vpop.xlane.xlu1 %1181  ;;  %v1336_v47 = vrot.slane %v1204_v28, %v1976_v35 }
  0xd0   :  { %v1221_v30 = vmul.f32 0.0009765625, %v1926_v3  ;;  %v1428_v3 = vsel %vm1330_vm6, %v1427_v27, %v1423_v43 }
  0xd1   :  { %v1928_v4 = vpop.xlane.xlu0 %1149 }
  0xd2   :  { %v1205_v38 = vmul.f32 0.0009765625, %v1928_v4  ;;  %v1437_v49 = vrot.slane %v1221_v30, %v1979_v36 }
  0xd4   :  { %v1930_v6 = vpop.xlane.xlu1 %1183 }
  0xd5   :  { %v1222_v42 = vmul.f32 0.0009765625, %v1930_v6  ;;  %v1331_v6 = vsel %vm1330_vm6, %v1329_v33, %v1324_v44 }
  0xd6   :  { %v1338_v57 = vsel %vm1337_vm7, %v1336_v47, %v1331_v6 }
  0xd7   :  { %v1932_v7 = vpop.xlane.xlu0 %1151  ;;  %v1442_v51 = vrot.slane %v1222_v42, %v1982_v37  ;;  %v1548_v42 = vld [vmem:[%s2111_s3] sm:$0xff] }
  0xd8   :  { %v1206_v48 = vmul.f32 0.0009765625, %v1932_v7  ;;  %v1433_v7 = vsel %vm1337_vm7, %v1432_v45, %v1428_v3  ;;  %v1676_v3 = vld [vmem:[%s2112_s4] ss:$0 sm:$0xff] }
  0xd9   :  { %v1938_v10 = vpop.xlane.xlu1 %1185 }
  0xda   :  { %v1223_v31 = vmul.f32 0.0009765625, %v1938_v10  ;;  %v1343_v10 = vrot.slane %v1205_v38, %v1979_v36  ;;  %v1438_v36 = vsel %vm1344_vm8, %v1437_v49, %v1433_v7  ;;  %v1550_v38 = vld [vmem:[%s2111_s3 + $0x10] sm:$0xff] }
  0xdb   :  { %v1443_v15 = vsel %vm1351_vm9, %v1442_v51, %v1438_v36  ;;  %1739 = vmatpush3.msra.mxu1 %v1550_v38 }
  0xdc   :  { %v1949_v21 = vpop.xlane.xlu0 %1153  ;;  %v1345_v60 = vsel %vm1344_vm8, %v1343_v10, %v1338_v57  ;;  %1740 = vmatprep.subr.mxu1 %v1800_v19 }
  0xdd   :  { %v1207_v53 = vmul.f32 0.0009765625, %v1949_v21  ;;  %v1350_v21 = vrot.slane %v1206_v48, %v1982_v37  ;;  %v1633_v48 = vld [vmem:[%s2113_s5] sm:$0x3] }
  0xdf   :  { %v1972_v32 = vpop.xlane.xlu1 %1187  ;;  %v1357_v14 = vrot.slane %v1207_v53, %v1985_v39 }
  0xe0   :  { %v1224_v4 = vmul.f32 0.0009765625, %v1972_v32  ;;  %v1447_v32 = vrot.slane %v1223_v31, %v1985_v39  ;;  %v1352_v39 = vsel %vm1351_vm9, %v1350_v21, %v1345_v60 }
  0xe1   :  { %v1990_v41 = vpop.xlane.xlu0 %1155  ;;  %v1359_v24 = vsel %vm1358_vm10, %v1357_v14, %v1352_v39 }
  0xe2   :  { %v1208_v55 = vmul.f32 0.0009765625, %v1990_v41  ;;  %v1448_v37 = vsel %vm1358_vm10, %v1447_v32, %v1443_v15 }
  0xe4   :  { %v1190_v11 = vpop.xlane.xlu1 %1189  ;;  %v1364_v61 = vrot.slane %v1208_v55, %v1988_v40 }
  0xe5   :  { %v1225_v54 = vmul.f32 0.0009765625, %v1190_v11  ;;  %v1452_v11 = vrot.slane %v1224_v4, %v1988_v40 }
  0xe7   :  { %v1158_v16 = vpop.xlane.xlu0 %1157  ;;  %v1457_v41 = vrot.slane %v1225_v54, %v1994_v46  ;;  %v1453_v22 = vsel %vm1365_vm11, %v1452_v11, %v1448_v37 }
  0xe8   :  { %v1209_v56 = vmul.f32 0.0009765625, %v1158_v16 }
  0xe9   :  { %v1192_v0 = vpop.xlane.xlu1 %1191  ;;  %v1458_v40 = vsel %vm1372_vm12, %v1457_v41, %v1453_v22 }
  0xea   :  { %v1226_v35 = vmul.f32 0.0009765625, %v1192_v0  ;;  %v1371_v17 = vrot.slane %v1209_v56, %v1994_v46  ;;  %v1366_v46 = vsel %vm1365_vm11, %v1364_v61, %v1359_v24 }
  0xec   :  { %v1160_v2 = vpop.xlane.xlu0 %1159  ;;  %v1462_v16 = vrot.slane %v1226_v35, %v1998_v50  ;;  %v1373_v9 = vsel %vm1372_vm12, %v1371_v17, %v1366_v46 }
  0xed   :  { %v1210_v58 = vmul.f32 0.0009765625, %v1160_v2  ;;  %v1675_v2 = vld [vmem:[%s2110_s2] ss:$0 sm:$0xff]  ;;  %s1802_s2 = smov [#allocation6]  }
  0xee   :  { %v1463_v27 = vsel %vm1379_vm13, %v1462_v16, %v1458_v40 }
  0xef   :  { %v1194_v5 = vpop.xlane.xlu1 %1193  ;;  %v1378_v23 = vrot.slane %v1210_v58, %v1998_v50 }
  0xf0   :  { %v1227_v12 = vmul.f32 0.0009765625, %v1194_v5 }
  0xf1   :  { %v1162_v52 = vpop.xlane.xlu0 %1161  ;;  %v1380_v50 = vsel %vm1379_vm13, %v1378_v23, %v1373_v9 }
  0xf2   :  { %v1211_v59 = vmul.f32 0.0009765625, %v1162_v52  ;;  %v1467_v18 = vrot.slane %v1227_v12, %v2004_v13 }
  0xf4   :  { %v1196_v62 = vpop.xlane.xlu1 %1195  ;;  %v1385_v0 = vrot.slane %v1211_v59, %v2004_v13  ;;  %v1468_v29 = vsel %vm1386_vm14, %v1467_v18, %v1463_v27 }
  0xf5   :  { %v1228_v63 = vmul.f32 0.0009765625, %v1196_v62 }
  0xf6   :  { %v1387_v13 = vsel %vm1386_vm14, %v1385_v0, %v1380_v50 }
  0xf7   :  { %v1472_v25 = vrot.slane %v1228_v63, %v2016_v20  ;;  %v1164_v26 = vpop.xlane.xlu0 %1163 }
  0xf8   :  { %v1212_v28 = vmul.f32 0.0009765625, %v1164_v26 }
  0xf9   :  { %v1473_v30 = vsel %vm1393_vm15, %v1472_v25, %v1468_v29 }
  0xfa   :  { %v1392_v33 = vrot.slane %v1212_v28, %v2016_v20  ;;  %v1549_v20 = vld [vmem:[%s2111_s3 + $0x8] sm:$0xff]  ;;  %s1666_s3 = sshll.u32 %s1802_s2, 4  ;;  %s1667_s3 = int_to_ptr.vmem [resolvable:$true] %s1666_s3 }
  0xfb   :  { %1741 = vmatpush3.msra.mxu1 %v1549_v20  ;;  %s1773_s4 = scalar_lea.vmem %s1667_s3, 32  ;;  %p1778_p6 = scmp.lt.s32.totalorder %s1667_s3, %s1667_s3 }
  0xfc   :  { %v1394_v1 = vsel %vm1393_vm15, %v1392_v33, %v1387_v13  ;;  %1742 = vmatprep.subr.mxu1 %v1800_v19  ;;  %p1774_p5 = scmp.ne.s32.totalorder %s1667_s3, %s1773_s4  ;;  %p1779_p7 = scmp.lt.s32.totalorder %s1773_s4, %s1773_s4 }
  0xfd   :  { %v1475_v34 = vsel %vm1474_vm0, %v1473_v30, %v1394_v1  ;;  %1743 = vmatpush3.msra.mxu1 %v1548_v42 }
  0xfe   :  { %1734 = vmatmul.mubr.f32.vlgmr.msra.gmra.mxu0 %v1475_v34  ;;  %p1780_p8 = por %p1779_p7, %p1778_p6 }
 0x100   :  { %p1781_p9 = pnand %p1780_p8, %p1774_p5 }
 0x1be   :  { %v1543_v43 = vpop.f32.mrf.mxu0 }
 0x1bf   :  { %v1544_v44 = vadd.f32 %v1675_v2, %v1543_v43 }
 0x1c0   :  { %v1735_v45 = vpop.f32.mrf.mxu0 }
 0x1c1   :  { %v1547_v31 = vmax.f32 %v1544_v44, 0.0 }
 0x1c3   :  { %1745 = vmatmul.mubr.msk.f32.vlgmr.msra.gmra.mxu1 %vm1559_vm1, %v1547_v31 }
 0x283   :  { %v1629_v47 = vpop.f32.mrf.mxu1 }
 0x284   :  { %v1630_v4 = vadd.f32 %v1676_v3, %v1629_v47 }
 0x285   :  { %v1746_v6 = vpop.f32.mrf.mxu1 }
 0x286   :  { %v1634_v49 = vadd.f32 %v1633_v48, %v1630_v4 }
 0x288   :  { %v1636_v53 = vsel %vm1635_vm2, %v1634_v49, -inf }
 0x289   :  { %1637 = vmax.xlane.f32.xlu0 %v1636_v53 }
 0x312   :  { %v1638_v54 = vpop.xlane.xlu0 %1637 }
 0x313   :  { %vm1639_vm3 = vcmp.ge.f32.partialorder %v1634_v49, %v1638_v54 }
 0x314   :  { %v1640_v5 = vsel %vm1639_vm3, %v1934_v8, 1073741824 }
 0x315   :  { %v1641_v10 = vsel %vm1635_vm2, %v1640_v5, 2147483647 }
 0x316   :  { %v1643_v51 = vshra.s32 %v1641_v10, 16  ;;  %v1642_v35 = vand.u32 65535, %v1641_v10 }
 0x318   :  { %v1645_v55 = vcvt.s32.f32 %v1643_v51  ;;  %v1644_v32 = vcvt.s32.f32 %v1642_v35 }
 0x31a   :  { %1646 = vmin.xlane.f32.xlu1 %v1645_v55 }
 0x3a3   :  { %v1647_v7 = vpop.xlane.xlu1 %1646 }
 0x3a4   :  { %vm1648_vm4 = vcmp.eq.f32.partialorder %v1645_v55, %v1647_v7  ;;  %v1653_v12 = vcvt.f32.s32 %v1647_v7 }
 0x3a5   :  { %v1649_v56 = vsel %vm1648_vm4, %v1644_v32, inf }
 0x3a6   :  { %1650 = vmin.xlane.f32.xlu0 %v1649_v56  ;;  %v1654_v57 = vshll.u32 %v1653_v12, 16 }
 0x42f   :  { %v1651_v52 = vpop.xlane.xlu0 %1650 }
 0x430   :  { %v1652_v21 = vcvt.f32.s32 %v1651_v52 }
 0x432   :  { %v1655_v11 = vadd.s32 %v1654_v57, %v1652_v21 }
 0x434   :  { %vm1656_vm5 = vcmp.eq.s32.totalorder %v1934_v8, %v1655_v11 }
 0x435   :  { %v1678_v58 = vsel %vm1656_vm5, 1.0, %v1800_v19 }
 0x436   :  { %1659 = vst.msk [vmem:[#allocation6] sm:$0x3] %vm1635_vm2, %v1678_v58 }
 0x437   :  { %1784 = shalt.err (!%p1781_p9)
}
 0x438   :  { %1669 = dma.vmem_to_hbm [thread:$0]  %s1667_s3, 32, %s2114_s6, [#allocation5]  }
 0x439   :  { %1795 = dma.done.wait [#allocation5], 32  }
 0x43a   :  { %1796 = vsyncadd [#allocation5], 4294967264 }
 0x43b   :  { %1673 = vsyncpa [#allocation4], 1 }
 0x43c   :  { %1674 = vsyncpa [#allocation5], 1 }

</bundles_post_ra>
